<compile_context>
chip_gen: v5e
topology: v5e:2x2
jax: 0.10.0
libtpu: 0.0.40
codegen_flags: <defaults>
</compile_context>

<pallas_src>
import functools

import jax
import jax.numpy as jnp
import numpy as np
from jax import lax
from jax.experimental import pallas as pl
from jax.experimental.pallas import tpu as pltpu


def _round_up(x, m):
    return ((x + m - 1) // m) * m


def _fused_dilated_block_kernel(x_ref, w_ref, b_ref, mask_ref, o_ref,
                                act_a, act_b, *,
                                Bt, L, C_in, c_pad, K, dilations, pad_buf):
    """Whole dilated-conv + ReLU stack for one batch tile.

    x_ref    : (Bt, L, C_in)         f32   batch tile, unpadded channels
    w_ref    : (NL, K*c_pad, c_pad)  bf16  stacked im2col-reshaped weights
    b_ref    : (NL, 1, c_pad)        f32   stacked biases (zero in pad lanes)
    mask_ref : (Rcomp, 1)            f32   1.0 on valid rows, 0.0 on halo rows
    o_ref    : (Bt, L, c_pad)        f32
    act_a/b  : (Rp, c_pad)           bf16  ping-pong activation slabs w/ halos
    """
    num_layers = len(dilations)
    Lp = L + 2 * pad_buf
    Rp = Bt * Lp
    Rcomp = Rp - 2 * pad_buf

    # --- step prologue (step-local: correct under megacore grid splitting) --
    # act_a is zero-filled in bf16: this provides (a) the zero halos for
    # layer 0, and (b) the zero fill of the padded channel lanes [C_in, c_pad)
    # of the incoming x tile.  Half the bytes of the old f32 full zero, and
    # act_b is NOT fully zeroed any more.
    act_a[...] = jnp.zeros_like(act_a)
    zeros_halo = jnp.zeros((pad_buf, c_pad), dtype=act_b.dtype)
    act_b[pl.ds(0, pad_buf), :] = zeros_halo
    act_b[pl.ds(Rp - pad_buf, pad_buf), :] = zeros_halo
    # (act_b's inter-batch halo rows are written with explicit zeros by the
    #  masked store of layer 0 below, before act_b is ever read.)

    # Copy the batch tile into act_a's interiors (channel pad fused here; the
    # pad lanes are already zero from the bf16 zero-fill above).
    for b in range(Bt):
        act_a[pl.ds(b * Lp + pad_buf, L), pl.ds(0, C_in)] = (
            x_ref[b].astype(act_a.dtype))

    mask = mask_ref[...]                                   # (Rcomp, 1) f32

    # --- layer loop (static, fully unrolled) --------------------------------
    for l, d in enumerate(dilations):
        src = act_a if l % 2 == 0 else act_b
        dst = act_b if l % 2 == 0 else act_a
        pad_d = d * (K - 1) // 2                           # 'same' padding

        # im2col: K dilated taps gathered straight from the bf16 buffer (no
        # per-layer cast) into one (Rcomp, K*c_pad) slab -> ONE deep MXU
        # matmul covering all Bt folded batch elements.
        taps = []
        for k in range(K):                                 # K = 3, static
            start = pad_buf - pad_d + k * d
            taps.append(src[pl.ds(start, Rcomp), :])
        lhs = jnp.concatenate(taps, axis=-1)               # (Rcomp, K*c_pad)

        acc = jnp.dot(lhs, w_ref[l], preferred_element_type=jnp.float32)
        acc = jnp.maximum(acc + b_ref[l], 0.0)             # bias + ReLU in f32

        if l == num_layers - 1:
            # Final layer: write only the valid rows of each batch element,
            # lane-dense (full c_pad lanes), straight to the output block.
            for b in range(Bt):
                o_ref[b] = acc[b * Lp:b * Lp + L, :]
        else:
            # Intermediate layer: zero the halo-position rows so the next
            # layer again sees zero 'same' padding, store bf16 (1 cast).
            acc = acc * mask
            dst[pl.ds(pad_buf, Rcomp), :] = acc.astype(dst.dtype)


def _pick_batch_tile(N, L, C_in, c_pad, num_layers, K, pad_buf,
                     row_cap=1024, bt_cap=32,
                     vmem_budget=36 * 1024 * 1024):
    """Largest divisor of N whose batch tile keeps the VMEM estimate in budget
    (sized with v7x's 64 MiB/TC in mind)."""
    Lp = L + 2 * pad_buf

    def vmem_est(bt):
        rp = bt * Lp
        est = 0
        est += 2 * bt * L * C_in * 4                       # x blocks (x2 bufs)
        est += 2 * bt * L * c_pad * 4                      # out blocks (x2)
        est += 2 * num_layers * K * c_pad * c_pad * 2      # weights (x2)
        est += 2 * num_layers * c_pad * 4                  # biases (x2)
        est += 2 * rp * c_pad * 2                          # bf16 ping-pong
        est += rp * (K * c_pad * 2 + 2 * c_pad * 4)        # im2col slab + acc
        return est

    best = 1
    for bt in range(2, min(N, bt_cap) + 1):
        if N % bt:
            continue
        if bt * L > row_cap:
            break
        if vmem_est(bt) <= vmem_budget:
            best = bt
    return best


def dilated_conv_block(x_ncl, params, dilations, kernel_size=3):
    """Fused DilatedConvBlock forward.

    x_ncl : (N, C_in, L) float32 (same axis convention as the PyTorch module)
    params: list of (w, b), w: (C_out, C_in, K) [PyTorch layout], b: (C_out,)
    Returns (N, C_out, L) float32.
    """
    N, C_in, L = x_ncl.shape
    K = kernel_size
    assert K % 2 == 1, "'same' padding formula requires odd kernel_size"
    assert len(params) == len(dilations)
    num_layers = len(dilations)
    C_out = params[-1][0].shape[0]

    # Channel axis padded to a full 128-lane width (lane-dense vregs / MXU).
    c_max = max([C_in] + [w.shape[0] for (w, _) in params])
    c_pad = _round_up(c_max, 128)

    # Halo: >= largest 'same' padding, rounded to 16 rows (bf16 packing).
    pad_max = max(dilations) * (K - 1) // 2
    pad_buf = max(16, _round_up(pad_max, 16))
    Lp = L + 2 * pad_buf

    Bt = _pick_batch_tile(N, L, C_in, c_pad, num_layers, K, pad_buf)
    Rp = Bt * Lp
    Rcomp = Rp - 2 * pad_buf

    # --- one-time glue outside the kernel ------------------------------------
    # NCL -> NLC only; the channel pad to c_pad lanes is fused into the kernel.
    x_nlc = jnp.transpose(x_ncl, (0, 2, 1)).astype(jnp.float32)

    # Stack + pad + im2col-reshape all weights once: (NL, K*c_pad, c_pad) bf16.
    w_list, b_list = [], []
    for (w, b) in params:
        co, ci, _ = w.shape
        w_kio = jnp.transpose(w, (2, 1, 0))                        # (K, Ci, Co)
        w_kio = jnp.pad(w_kio, ((0, 0), (0, c_pad - ci), (0, c_pad - co)))
        w_list.append(w_kio.reshape(K * c_pad, c_pad))
        b_list.append(jnp.pad(b, (0, c_pad - co)))
    w_stack = jnp.stack(w_list).astype(jnp.bfloat16)               # (NL,K*cp,cp)
    b_stack = jnp.stack(b_list).astype(jnp.float32)[:, None, :]    # (NL,1,cp)

    # Static row-validity mask over the fused row slab: result row r belongs
    # to batch element r // Lp and is valid iff (r % Lp) < L.
    mask_np = np.zeros((Rcomp, 1), np.float32)
    for b in range(Bt):
        mask_np[b * Lp:b * Lp + L] = 1.0
    row_mask = jnp.asarray(mask_np)

    kernel = functools.partial(
        _fused_dilated_block_kernel,
        Bt=Bt, L=L, C_in=C_in, c_pad=c_pad, K=K,
        dilations=tuple(dilations), pad_buf=pad_buf)

    out_nlc = pl.pallas_call(
        kernel,
        out_shape=jax.ShapeDtypeStruct((N, L, c_pad), jnp.float32),
        grid=(N // Bt,),
        in_specs=[
            pl.BlockSpec((Bt, L, C_in), lambda t: (t, 0, 0)),
            pl.BlockSpec((num_layers, K * c_pad, c_pad), lambda t: (0, 0, 0)),
            pl.BlockSpec((num_layers, 1, c_pad), lambda t: (0, 0, 0)),
            pl.BlockSpec((Rcomp, 1), lambda t: (0, 0)),
        ],
        out_specs=pl.BlockSpec((Bt, L, c_pad), lambda t: (t, 0, 0)),
        scratch_shapes=[
            pltpu.VMEM((Rp, c_pad), jnp.bfloat16),
            pltpu.VMEM((Rp, c_pad), jnp.bfloat16),
        ],
        compiler_params=pltpu.CompilerParams(
            dimension_semantics=("parallel",),
            vmem_limit_bytes=48 * 1024 * 1024),
    )(x_nlc, w_stack, b_stack, row_mask)

    # Crop the channel padding, NLC -> NCL (caller expects PyTorch layout).
    return jnp.transpose(out_nlc[:, :, :C_out], (0, 2, 1))


def _reference_forward(x_ncl, params, dilations, kernel_size=3):
    """Pure-JAX f32 reference (lax.conv_general_dilated) for verification."""
    x = x_ncl
    for (w, b), d in zip(params, dilations):
        pad = d * (kernel_size - 1) // 2
        y = lax.conv_general_dilated(
            x, w,
            window_strides=(1,),
            padding=[(pad, pad)],
            rhs_dilation=(d,),
            dimension_numbers=("NCH", "OIH", "NCH"),
        )
        x = jnp.maximum(y + b[None, :, None], 0.0)
    return x


def init_params(key, in_channels, conv_channels, kernel_size, dilations):
    """Deterministic parameter init (PyTorch-style uniform fan-in scaling)."""
    params = []
    c_in = in_channels
    for _ in dilations:
        key, kw, kb = jax.random.split(key, 3)
        fan_in = c_in * kernel_size
        bound = 1.0 / jnp.sqrt(fan_in)
        w = jax.random.uniform(
            kw, (conv_channels, c_in, kernel_size),
            minval=-bound, maxval=bound, dtype=jnp.float32)
        b = jax.random.uniform(
            kb, (conv_channels,), minval=-bound, maxval=bound, dtype=jnp.float32)
        params.append((w, b))
        c_in = conv_channels
    return params


if __name__ == "__main__":
    # Small shapes consistent with Conv1d: x is (batch, in_channels, length).
    N, C_IN, L = 2, 4, 16
    CONV_CHANNELS = 32
    KERNEL_SIZE = 3
    DILATIONS = (1, 2, 4, 8)

    key = jax.random.PRNGKey(0)
    key, kx = jax.random.split(key)
    x = jax.random.normal(kx, (N, C_IN, L), dtype=jnp.float32)
    params = init_params(key, C_IN, CONV_CHANNELS, KERNEL_SIZE, DILATIONS)

    fwd = jax.jit(lambda xv, pv: dilated_conv_block(xv, pv, DILATIONS, KERNEL_SIZE))
    out = jax.block_until_ready(fwd(x, params))

    ref = jax.block_until_ready(
        _reference_forward(x, params, DILATIONS, KERNEL_SIZE))

    assert out.shape == (N, CONV_CHANNELS, L), out.shape
    # bf16 MXU operands / bf16-stored activations (f32 accumulation) -> allow
    # ~1e-2-level deviation from the pure-f32 reference.
    max_err = float(jnp.max(jnp.abs(out - ref)))
    assert jnp.allclose(out, ref, atol=5e-2, rtol=5e-2), f"max abs err {max_err}"

    print("KERNEL_OK")
</pallas_src>

<mosaic_0001>
module attributes {stable_mosaic.version = 11 : i64} {
  func.func @_fused_dilated_block_kernel(%arg0: i32, %arg1: memref<2x16x4xf32, #tpu.memory_space<vmem>>, %arg2: memref<4x384x128xbf16, #tpu.memory_space<vmem>>, %arg3: memref<4x1x128xf32, #tpu.memory_space<vmem>>, %arg4: memref<64x1xf32, #tpu.memory_space<vmem>>, %arg5: memref<2x16x128xf32, #tpu.memory_space<vmem>>, %arg6: memref<96x128xbf16, #tpu.memory_space<vmem>>, %arg7: memref<96x128xbf16, #tpu.memory_space<vmem>>) attributes {dimension_semantics = [#tpu.dimension_semantics<parallel>], iteration_bounds = array<i64: 1>, scalar_prefetch = 0 : i64, scratch_operands = 2 : i64, tpu.core_type = #tpu.core_type<tc>, window_params = [{transform_indices = @transform_0, window_bounds = array<i64: 2, 16, 4>}, {pipeline_mode = #tpu.pipeline_mode<synchronous>, transform_indices = @transform_1, window_bounds = array<i64: 4, 384, 128>}, {pipeline_mode = #tpu.pipeline_mode<synchronous>, transform_indices = @transform_2, window_bounds = array<i64: 4, 1, 128>}, {pipeline_mode = #tpu.pipeline_mode<synchronous>, transform_indices = @transform_3, window_bounds = array<i64: 64, 1>}, {transform_indices = @transform_4, window_bounds = array<i64: 2, 16, 128>}]} {
    %cst = arith.constant 0.000000e+00 : bf16
    %0 = vector.broadcast %cst : bf16 to vector<96x128xbf16>
    %c0 = arith.constant 0 : index
    %c0_0 = arith.constant 0 : index
    %1 = vector.load %arg6[%c0, %c0_0] : memref<96x128xbf16, #tpu.memory_space<vmem>>, vector<96x128xbf16>
    tpu.vector_store %arg6[%c0, %c0_0], %0 {strides = array<i32>} : memref<96x128xbf16, #tpu.memory_space<vmem>>, vector<96x128xbf16>,
    %cst_1 = arith.constant 0.000000e+00 : bf16
    %2 = vector.broadcast %cst_1 : bf16 to vector<16x128xbf16>
    %c0_2 = arith.constant 0 : index
    %c0_3 = arith.constant 0 : index
    %3 = vector.load %arg7[%c0_2, %c0_3] : memref<96x128xbf16, #tpu.memory_space<vmem>>, vector<16x128xbf16>
    tpu.vector_store %arg7[%c0_2, %c0_3], %2 {strides = array<i32>} : memref<96x128xbf16, #tpu.memory_space<vmem>>, vector<16x128xbf16>,
    %c80 = arith.constant 80 : index
    %c0_4 = arith.constant 0 : index
    %4 = vector.load %arg7[%c80, %c0_4] : memref<96x128xbf16, #tpu.memory_space<vmem>>, vector<16x128xbf16>
    tpu.vector_store %arg7[%c80, %c0_4], %2 {strides = array<i32>} : memref<96x128xbf16, #tpu.memory_space<vmem>>, vector<16x128xbf16>,
    %c0_5 = arith.constant 0 : index
    %c0_6 = arith.constant 0 : index
    %c0_7 = arith.constant 0 : index
    %5 = vector.load %arg1[%c0_5, %c0_6, %c0_7] : memref<2x16x4xf32, #tpu.memory_space<vmem>>, vector<1x16x4xf32>
    %6 = vector.shape_cast %5 : vector<1x16x4xf32> to vector<16x4xf32>
    %7 = arith.truncf %6 : vector<16x4xf32> to vector<16x4xbf16>
    %c16 = arith.constant 16 : index
    %c0_8 = arith.constant 0 : index
    %8 = vector.load %arg6[%c16, %c0_8] : memref<96x128xbf16, #tpu.memory_space<vmem>>, vector<16x4xbf16>
    tpu.vector_store %arg6[%c16, %c0_8], %7 {strides = array<i32>} : memref<96x128xbf16, #tpu.memory_space<vmem>>, vector<16x4xbf16>,
    %c1 = arith.constant 1 : index
    %c0_9 = arith.constant 0 : index
    %c0_10 = arith.constant 0 : index
    %9 = vector.load %arg1[%c1, %c0_9, %c0_10] : memref<2x16x4xf32, #tpu.memory_space<vmem>>, vector<1x16x4xf32>
    %10 = vector.shape_cast %9 : vector<1x16x4xf32> to vector<16x4xf32>
    %11 = arith.truncf %10 : vector<16x4xf32> to vector<16x4xbf16>
    %c64 = arith.constant 64 : index
    %c0_11 = arith.constant 0 : index
    %12 = vector.load %arg6[%c64, %c0_11] : memref<96x128xbf16, #tpu.memory_space<vmem>>, vector<16x4xbf16>
    tpu.vector_store %arg6[%c64, %c0_11], %11 {strides = array<i32>} : memref<96x128xbf16, #tpu.memory_space<vmem>>, vector<16x4xbf16>,
    %c0_12 = arith.constant 0 : index
    %c0_13 = arith.constant 0 : index
    %13 = vector.load %arg4[%c0_12, %c0_13] : memref<64x1xf32, #tpu.memory_space<vmem>>, vector<64x1xf32>
    %c15 = arith.constant 15 : index
    %c0_14 = arith.constant 0 : index
    %14 = vector.load %arg6[%c15, %c0_14] : memref<96x128xbf16, #tpu.memory_space<vmem>>, vector<64x128xbf16>
    %c16_15 = arith.constant 16 : index
    %c0_16 = arith.constant 0 : index
    %15 = vector.load %arg6[%c16_15, %c0_16] : memref<96x128xbf16, #tpu.memory_space<vmem>>, vector<64x128xbf16>
    %c17 = arith.constant 17 : index
    %c0_17 = arith.constant 0 : index
    %16 = vector.load %arg6[%c17, %c0_17] : memref<96x128xbf16, #tpu.memory_space<vmem>>, vector<64x128xbf16>
    %17 = tpu.concatenate %14, %15, %16 in 1 : vector<64x128xbf16>, vector<64x128xbf16>, vector<64x128xbf16> -> vector<64x384xbf16>
    %c0_18 = arith.constant 0 : index
    %c0_19 = arith.constant 0 : index
    %c0_20 = arith.constant 0 : index
    %18 = vector.load %arg2[%c0_18, %c0_19, %c0_20] : memref<4x384x128xbf16, #tpu.memory_space<vmem>>, vector<1x384x128xbf16>
    %19 = vector.shape_cast %18 : vector<1x384x128xbf16> to vector<384x128xbf16>
    %cst_21 = arith.constant dense<0.000000e+00> : vector<64x128xf32>
    %20 = tpu.matmul %17, %19, %cst_21 {dimension_numbers = #tpu.dot_dimension_numbers<[1], [0], [0], [1], [0, 0, 1, 1], [], []>} : vector<64x384xbf16>, vector<384x128xbf16>, vector<64x128xf32> -> vector<64x128xf32>
    %c0_22 = arith.constant 0 : index
    %c0_23 = arith.constant 0 : index
    %c0_24 = arith.constant 0 : index
    %21 = vector.load %arg3[%c0_22, %c0_23, %c0_24] : memref<4x1x128xf32, #tpu.memory_space<vmem>>, vector<1x1x128xf32>
    %22 = vector.shape_cast %21 : vector<1x1x128xf32> to vector<1x128xf32>
    %23 = vector.broadcast %22 : vector<1x128xf32> to vector<64x128xf32>
    %24 = arith.addf %20, %23 : vector<64x128xf32>
    %cst_25 = arith.constant 0.000000e+00 : f32
    %25 = vector.broadcast %cst_25 : f32 to vector<64x128xf32>
    %26 = arith.maximumf %24, %25 : vector<64x128xf32>
    %27 = vector.broadcast %13 : vector<64x1xf32> to vector<64x128xf32>
    %28 = arith.mulf %26, %27 : vector<64x128xf32>
    %29 = arith.truncf %28 : vector<64x128xf32> to vector<64x128xbf16>
    %c16_26 = arith.constant 16 : index
    %c0_27 = arith.constant 0 : index
    %30 = vector.load %arg7[%c16_26, %c0_27] : memref<96x128xbf16, #tpu.memory_space<vmem>>, vector<64x128xbf16>
    tpu.vector_store %arg7[%c16_26, %c0_27], %29 {strides = array<i32>} : memref<96x128xbf16, #tpu.memory_space<vmem>>, vector<64x128xbf16>,
    %c14 = arith.constant 14 : index
    %c0_28 = arith.constant 0 : index
    %31 = vector.load %arg7[%c14, %c0_28] : memref<96x128xbf16, #tpu.memory_space<vmem>>, vector<64x128xbf16>
    %c16_29 = arith.constant 16 : index
    %c0_30 = arith.constant 0 : index
    %32 = vector.load %arg7[%c16_29, %c0_30] : memref<96x128xbf16, #tpu.memory_space<vmem>>, vector<64x128xbf16>
    %c18 = arith.constant 18 : index
    %c0_31 = arith.constant 0 : index
    %33 = vector.load %arg7[%c18, %c0_31] : memref<96x128xbf16, #tpu.memory_space<vmem>>, vector<64x128xbf16>
    %34 = tpu.concatenate %31, %32, %33 in 1 : vector<64x128xbf16>, vector<64x128xbf16>, vector<64x128xbf16> -> vector<64x384xbf16>
    %c1_32 = arith.constant 1 : index
    %c0_33 = arith.constant 0 : index
    %c0_34 = arith.constant 0 : index
    %35 = vector.load %arg2[%c1_32, %c0_33, %c0_34] : memref<4x384x128xbf16, #tpu.memory_space<vmem>>, vector<1x384x128xbf16>
    %36 = vector.shape_cast %35 : vector<1x384x128xbf16> to vector<384x128xbf16>
    %cst_35 = arith.constant dense<0.000000e+00> : vector<64x128xf32>
    %37 = tpu.matmul %34, %36, %cst_35 {dimension_numbers = #tpu.dot_dimension_numbers<[1], [0], [0], [1], [0, 0, 1, 1], [], []>} : vector<64x384xbf16>, vector<384x128xbf16>, vector<64x128xf32> -> vector<64x128xf32>
    %c1_36 = arith.constant 1 : index
    %c0_37 = arith.constant 0 : index
    %c0_38 = arith.constant 0 : index
    %38 = vector.load %arg3[%c1_36, %c0_37, %c0_38] : memref<4x1x128xf32, #tpu.memory_space<vmem>>, vector<1x1x128xf32>
    %39 = vector.shape_cast %38 : vector<1x1x128xf32> to vector<1x128xf32>
    %40 = vector.broadcast %39 : vector<1x128xf32> to vector<64x128xf32>
    %41 = arith.addf %37, %40 : vector<64x128xf32>
    %cst_39 = arith.constant 0.000000e+00 : f32
    %42 = vector.broadcast %cst_39 : f32 to vector<64x128xf32>
    %43 = arith.maximumf %41, %42 : vector<64x128xf32>
    %44 = vector.broadcast %13 : vector<64x1xf32> to vector<64x128xf32>
    %45 = arith.mulf %43, %44 : vector<64x128xf32>
    %46 = arith.truncf %45 : vector<64x128xf32> to vector<64x128xbf16>
    %c16_40 = arith.constant 16 : index
    %c0_41 = arith.constant 0 : index
    %47 = vector.load %arg6[%c16_40, %c0_41] : memref<96x128xbf16, #tpu.memory_space<vmem>>, vector<64x128xbf16>
    tpu.vector_store %arg6[%c16_40, %c0_41], %46 {strides = array<i32>} : memref<96x128xbf16, #tpu.memory_space<vmem>>, vector<64x128xbf16>,
    %c12 = arith.constant 12 : index
    %c0_42 = arith.constant 0 : index
    %48 = vector.load %arg6[%c12, %c0_42] : memref<96x128xbf16, #tpu.memory_space<vmem>>, vector<64x128xbf16>
    %c16_43 = arith.constant 16 : index
    %c0_44 = arith.constant 0 : index
    %49 = vector.load %arg6[%c16_43, %c0_44] : memref<96x128xbf16, #tpu.memory_space<vmem>>, vector<64x128xbf16>
    %c20 = arith.constant 20 : index
    %c0_45 = arith.constant 0 : index
    %50 = vector.load %arg6[%c20, %c0_45] : memref<96x128xbf16, #tpu.memory_space<vmem>>, vector<64x128xbf16>
    %51 = tpu.concatenate %48, %49, %50 in 1 : vector<64x128xbf16>, vector<64x128xbf16>, vector<64x128xbf16> -> vector<64x384xbf16>
    %c2 = arith.constant 2 : index
    %c0_46 = arith.constant 0 : index
    %c0_47 = arith.constant 0 : index
    %52 = vector.load %arg2[%c2, %c0_46, %c0_47] : memref<4x384x128xbf16, #tpu.memory_space<vmem>>, vector<1x384x128xbf16>
    %53 = vector.shape_cast %52 : vector<1x384x128xbf16> to vector<384x128xbf16>
    %cst_48 = arith.constant dense<0.000000e+00> : vector<64x128xf32>
    %54 = tpu.matmul %51, %53, %cst_48 {dimension_numbers = #tpu.dot_dimension_numbers<[1], [0], [0], [1], [0, 0, 1, 1], [], []>} : vector<64x384xbf16>, vector<384x128xbf16>, vector<64x128xf32> -> vector<64x128xf32>
    %c2_49 = arith.constant 2 : index
    %c0_50 = arith.constant 0 : index
    %c0_51 = arith.constant 0 : index
    %55 = vector.load %arg3[%c2_49, %c0_50, %c0_51] : memref<4x1x128xf32, #tpu.memory_space<vmem>>, vector<1x1x128xf32>
    %56 = vector.shape_cast %55 : vector<1x1x128xf32> to vector<1x128xf32>
    %57 = vector.broadcast %56 : vector<1x128xf32> to vector<64x128xf32>
    %58 = arith.addf %54, %57 : vector<64x128xf32>
    %cst_52 = arith.constant 0.000000e+00 : f32
    %59 = vector.broadcast %cst_52 : f32 to vector<64x128xf32>
    %60 = arith.maximumf %58, %59 : vector<64x128xf32>
    %61 = vector.broadcast %13 : vector<64x1xf32> to vector<64x128xf32>
    %62 = arith.mulf %60, %61 : vector<64x128xf32>
    %63 = arith.truncf %62 : vector<64x128xf32> to vector<64x128xbf16>
    %c16_53 = arith.constant 16 : index
    %c0_54 = arith.constant 0 : index
    %64 = vector.load %arg7[%c16_53, %c0_54] : memref<96x128xbf16, #tpu.memory_space<vmem>>, vector<64x128xbf16>
    tpu.vector_store %arg7[%c16_53, %c0_54], %63 {strides = array<i32>} : memref<96x128xbf16, #tpu.memory_space<vmem>>, vector<64x128xbf16>,
    %c8 = arith.constant 8 : index
    %c0_55 = arith.constant 0 : index
    %65 = vector.load %arg7[%c8, %c0_55] : memref<96x128xbf16, #tpu.memory_space<vmem>>, vector<64x128xbf16>
    %c16_56 = arith.constant 16 : index
    %c0_57 = arith.constant 0 : index
    %66 = vector.load %arg7[%c16_56, %c0_57] : memref<96x128xbf16, #tpu.memory_space<vmem>>, vector<64x128xbf16>
    %c24 = arith.constant 24 : index
    %c0_58 = arith.constant 0 : index
    %67 = vector.load %arg7[%c24, %c0_58] : memref<96x128xbf16, #tpu.memory_space<vmem>>, vector<64x128xbf16>
    %68 = tpu.concatenate %65, %66, %67 in 1 : vector<64x128xbf16>, vector<64x128xbf16>, vector<64x128xbf16> -> vector<64x384xbf16>
    %c3 = arith.constant 3 : index
    %c0_59 = arith.constant 0 : index
    %c0_60 = arith.constant 0 : index
    %69 = vector.load %arg2[%c3, %c0_59, %c0_60] : memref<4x384x128xbf16, #tpu.memory_space<vmem>>, vector<1x384x128xbf16>
    %70 = vector.shape_cast %69 : vector<1x384x128xbf16> to vector<384x128xbf16>
    %cst_61 = arith.constant dense<0.000000e+00> : vector<64x128xf32>
    %71 = tpu.matmul %68, %70, %cst_61 {dimension_numbers = #tpu.dot_dimension_numbers<[1], [0], [0], [1], [0, 0, 1, 1], [], []>} : vector<64x384xbf16>, vector<384x128xbf16>, vector<64x128xf32> -> vector<64x128xf32>
    %c3_62 = arith.constant 3 : index
    %c0_63 = arith.constant 0 : index
    %c0_64 = arith.constant 0 : index
    %72 = vector.load %arg3[%c3_62, %c0_63, %c0_64] : memref<4x1x128xf32, #tpu.memory_space<vmem>>, vector<1x1x128xf32>
    %73 = vector.shape_cast %72 : vector<1x1x128xf32> to vector<1x128xf32>
    %74 = vector.broadcast %73 : vector<1x128xf32> to vector<64x128xf32>
    %75 = arith.addf %71, %74 : vector<64x128xf32>
    %cst_65 = arith.constant 0.000000e+00 : f32
    %76 = vector.broadcast %cst_65 : f32 to vector<64x128xf32>
    %77 = arith.maximumf %75, %76 : vector<64x128xf32>
    %78 = vector.extract_strided_slice %77 {offsets = [0, 0], sizes = [16, 128], strides = [1, 1]} : vector<64x128xf32> to vector<16x128xf32>
    %c0_66 = arith.constant 0 : index
    %c0_67 = arith.constant 0 : index
    %c0_68 = arith.constant 0 : index
    %79 = vector.load %arg5[%c0_66, %c0_67, %c0_68] : memref<2x16x128xf32, #tpu.memory_space<vmem>>, vector<1x16x128xf32>
    %80 = vector.shape_cast %79 : vector<1x16x128xf32> to vector<16x128xf32>
    %81 = vector.shape_cast %78 : vector<16x128xf32> to vector<1x16x128xf32>
    tpu.vector_store %arg5[%c0_66, %c0_67, %c0_68], %81 {strides = array<i32>} : memref<2x16x128xf32, #tpu.memory_space<vmem>>, vector<1x16x128xf32>,
    %82 = vector.extract_strided_slice %77 {offsets = [48, 0], sizes = [16, 128], strides = [1, 1]} : vector<64x128xf32> to vector<16x128xf32>
    %c1_69 = arith.constant 1 : index
    %c0_70 = arith.constant 0 : index
    %c0_71 = arith.constant 0 : index
    %83 = vector.load %arg5[%c1_69, %c0_70, %c0_71] : memref<2x16x128xf32, #tpu.memory_space<vmem>>, vector<1x16x128xf32>
    %84 = vector.shape_cast %83 : vector<1x16x128xf32> to vector<16x128xf32>
    %85 = vector.shape_cast %82 : vector<16x128xf32> to vector<1x16x128xf32>
    tpu.vector_store %arg5[%c1_69, %c0_70, %c0_71], %85 {strides = array<i32>} : memref<2x16x128xf32, #tpu.memory_space<vmem>>, vector<1x16x128xf32>,
    return
  }
  func.func @transform_0(%arg0: i32) -> (i32, i32, i32) {
    %c0_i32 = arith.constant 0 : i32
    %c0_i32_0 = arith.constant 0 : i32
    %c0_i32_1 = arith.constant 0 : i32
    return %arg0, %c0_i32, %c0_i32_0 : i32, i32, i32
  }
  func.func @transform_1(%arg0: i32) -> (i32, i32, i32) {
    %c0_i32 = arith.constant 0 : i32
    %c0_i32_0 = arith.constant 0 : i32
    %c0_i32_1 = arith.constant 0 : i32
    %c0_i32_2 = arith.constant 0 : i32
    return %c0_i32, %c0_i32_0, %c0_i32_1 : i32, i32, i32
  }
  func.func @transform_2(%arg0: i32) -> (i32, i32, i32) {
    %c0_i32 = arith.constant 0 : i32
    %c0_i32_0 = arith.constant 0 : i32
    %c0_i32_1 = arith.constant 0 : i32
    %c0_i32_2 = arith.constant 0 : i32
    return %c0_i32, %c0_i32_0, %c0_i32_1 : i32, i32, i32
  }
  func.func @transform_3(%arg0: i32) -> (i32, i32) {
    %c0_i32 = arith.constant 0 : i32
    %c0_i32_0 = arith.constant 0 : i32
    %c0_i32_1 = arith.constant 0 : i32
    return %c0_i32, %c0_i32_0 : i32, i32
  }
  func.func @transform_4(%arg0: i32) -> (i32, i32, i32) {
    %c0_i32 = arith.constant 0 : i32
    %c0_i32_0 = arith.constant 0 : i32
    %c0_i32_1 = arith.constant 0 : i32
    return %arg0, %c0_i32, %c0_i32_0 : i32, i32, i32
  }
}

</mosaic_0001>

<bundles_post_ra>
// kernel: _lambda_.1
= control target key start
LH: loop header
LB: loop body
LE: loop exit
PB: predicated region body
PF: predicated region fallthrough
CT: control target
= control target key end

     0   :  { %v2696_v3 = vmov 0   ;;  %vm38_vm0 = vcmask 27648   ;;  %vm132_vm1 = vcmask 1042432   ;;  %vm93_vm2 = vsmask.f32 3328  ;;  %s3225_s1 = inlined_call_operand.vmem [shape: bf16[4,384,128], index: 1, kind: input, shape index: {}]   ;;  %s3226_s0 = inlined_call_operand.vmem [shape: f32[2,16,4], index: 0, kind: input, shape index: {}]   ;;  %s3227_s2 = inlined_call_operand.vmem [shape: f32[4,1,128], index: 2, kind: input, shape index: {}]   ;;  %s3228_s3 = inlined_call_operand.vmem [shape: f32[64,1], index: 3, kind: input, shape index: {}]   ;;  %s3229_s4 = inlined_call_operand.vmem [shape: f32[2,16,128], index: 4, kind: output, shape index: {}]  }
   0x1   :  { %v2350_v0 = vld [vmem:[%s3225_s1 + $0x38] sm:$0xff]  ;;  %2690 = vset.pattern.permute.xlu1 %v2696_v3  ;;  %2689 = vset.pattern.permute.xlu0 %v2696_v3  ;;  %19 = vst [vmem:[#allocation2 + $0x4] sm:$0xf] %v2696_v3  ;;  %v2349_v4 = vld [vmem:[%s3225_s1 + $0x30] sm:$0xff]  ;;  %v2348_v7 = vld [vmem:[%s3225_s1 + $0x28] sm:$0xff]  ;;  %vm696_vm4 = vcmask 1041408  }
   0x2   :  { %v2358_v1 = vld [vmem:[%s3225_s1 + $0x78] sm:$0xff]  ;;  %2691 = vset.pattern.permute.xlu2 %v2696_v3  ;;  %483 = vmatpush.bf16.msra.mxu0 %v2350_v0  ;;  %v2357_v5 = vld [vmem:[%s3225_s1 + $0x70] sm:$0xff]  ;;  %20 = vst [vmem:[#allocation2 + $0x8] sm:$0xf] %v2696_v3  ;;  %v2356_v8 = vld [vmem:[%s3225_s1 + $0x68] sm:$0xff]  ;;  %vm760_vm5 = vcmask 1044480  }
   0x3   :  { %v2366_v2 = vld [vmem:[%s3225_s1 + $0xb8] sm:$0xff]  ;;  %512 = vmatpush.bf16.msra.mxu1 %v2358_v1  ;;  %v2365_v6 = vld [vmem:[%s3225_s1 + $0xb0] sm:$0xff]  ;;  %21 = vst [vmem:[#allocation2 + $0xc] sm:$0xf] %v2696_v3  ;;  %v2364_v9 = vld [vmem:[%s3225_s1 + $0xa8] sm:$0xff]  ;;  %vm1171_vm6 = vcmask 1045504  }
   0x4   :  { %541 = vmatpush.bf16.msra.mxu2 %v2366_v2  ;;  %22 = vst [vmem:[#allocation2 + $0x10] sm:$0xf] %v2696_v3  ;;  %v34_v10 = vld [vmem:[%s3226_s0] sm:$0xff]  ;;  %v35_v11 = vld [vmem:[%s3226_s0 + $0x8] sm:$0xff]  ;;  %v1809_v12 = vld [vmem:[%s3226_s0 + $0x18] sm:$0xff] }
   0x5   :  { %27 = vst [vmem:[#allocation2 + $0x24] sm:$0xf] %v2696_v3  ;;  %v2347_v13 = vld [vmem:[%s3225_s1 + $0x20] sm:$0xff]  ;;  %v36_v16 = vpack.c.bf16 %v34_v10, %v34_v10  ;;  %v37_v17 = vpack.c.bf16 %v35_v11, %v35_v11  ;;  %v45_v18 = vpack.c.bf16 %v1809_v12, %v1809_v12  ;;  %v2346_v19 = vld [vmem:[%s3225_s1 + $0x18] sm:$0xff]  ;;  %v1808_v22 = vld [vmem:[%s3226_s0 + $0x10] sm:$0xff] }
   0x6   :  { %484 = vmatpush.bf16.msra.mxu0 %v2349_v4  ;;  %v2355_v14 = vld [vmem:[%s3225_s1 + $0x60] sm:$0xff]  ;;  %23 = vst [vmem:[#allocation2 + $0x14] sm:$0xf] %v2696_v3  ;;  %v2354_v20 = vld [vmem:[%s3225_s1 + $0x58] sm:$0xff]  ;;  %v2345_v23 = vld [vmem:[%s3225_s1 + $0x10] sm:$0xff]  ;;  %v44_v33 = vpack.c.bf16 %v1808_v22, %v1808_v22 }
   0x7   :  { %513 = vmatpush.bf16.msra.mxu1 %v2357_v5  ;;  %v2363_v15 = vld [vmem:[%s3225_s1 + $0xa0] sm:$0xff]  ;;  %24 = vst [vmem:[#allocation2 + $0x18] sm:$0xf] %v2696_v3  ;;  %v2362_v21 = vld [vmem:[%s3225_s1 + $0x98] sm:$0xff]  ;;  %v2353_v26 = vld [vmem:[%s3225_s1 + $0x50] sm:$0xff] }
   0x8   :  { %542 = vmatpush.bf16.msra.mxu2 %v2365_v6  ;;  %39 = vst.msk [vmem:[#allocation2 + $0x8] sm:$0xf] %vm38_vm0, %v36_v16  ;;  %v2598_v24 = vld [vmem:[#allocation2 + $0x4] sm:$0x8]  ;;  %v50_v31 = vld [vmem:[%s3228_s3 + $0x10] sm:$0xff]  ;;  %v2344_v47 = vld [vmem:[%s3225_s1 + $0x8] sm:$0xff] }
   0x9   :  { %40 = vst.msk [vmem:[#allocation2 + $0xc] sm:$0xf] %vm38_vm0, %v37_v17  ;;  %v48_v32 = vld [vmem:[%s3228_s3] sm:$0xff]  ;;  %v2361_v34 = vld [vmem:[%s3225_s1 + $0x90] sm:$0xff]  ;;  %590 = vperm.xlu1 %2690, %v50_v31   ;;  %v2352_v48 = vld [vmem:[%s3225_s1 + $0x48] sm:$0xff] }
   0xa   :  { %485 = vmatpush.bf16.msra.mxu0 %v2348_v7  ;;  %47 = vst.msk [vmem:[#allocation2 + $0x24] sm:$0xf] %vm38_vm0, %v45_v18  ;;  %580 = vperm.xlu0 %2689, %v48_v32   ;;  %v2360_v53 = vld [vmem:[%s3225_s1 + $0x88] sm:$0xff]  ;;  %v51_v62 = vld [vmem:[%s3228_s3 + $0x18] sm:$0xff]  ;;  %vm194_vm3 = vsmask.f32 4352 }
   0xb   :  { %514 = vmatpush.bf16.msra.mxu1 %v2356_v8  ;;  %25 = vst [vmem:[#allocation2 + $0x1c] sm:$0xf] %v2696_v3  ;;  %v49_v2 = vld [vmem:[%s3228_s3 + $0x8] sm:$0xff]  ;;  %v2351_v4 = vld [vmem:[%s3225_s1 + $0x40] sm:$0xff] }
   0xc   :  { %543 = vmatpush.bf16.msra.mxu2 %v2364_v9  ;;  %26 = vst [vmem:[#allocation2 + $0x20] sm:$0xf] %v2696_v3  ;;  %v2359_v9 = vld [vmem:[%s3225_s1 + $0x80] sm:$0xff] }
   0xd   :  { %28 = vst [vmem:[#allocation2 + $0x28] sm:$0xf] %v2696_v3  ;;  %v2785_v25 = vld [vmem:[#allocation2 + $0x10] sm:$0xff]  }
   0xe   :  { %486 = vmatpush.bf16.msra.mxu0 %v2347_v13  ;;  %31 = vst [vmem:[#allocation3 + $0x4] sm:$0xf] %v2696_v3  ;;  %v103_v27 = vshrl.u32 %v2785_v25, 16  ;;  %v106_v28 = vshll.u32 %v2785_v25, 16  ;;  %v134_v29 = vrot.slane %v2785_v25, 5 }
   0xf   :  { %515 = vmatpush.bf16.msra.mxu1 %v2355_v14  ;;  %v2665_v30 = vld [vmem:[#allocation2 + $0x4] sm:$0xf0]   ;;  %32 = vst [vmem:[#allocation3 + $0x28] sm:$0xf] %v2696_v3  ;;  %v2343_v3 = vld [vmem:[%s3225_s1] sm:$0xff] }
  0x10   :  { %544 = vmatpush.bf16.msra.mxu2 %v2363_v15  ;;  %v2667_v35 = vld [vmem:[#allocation2 + $0xc] sm:$0xff]   ;;  %v2599_v36 = vor.u32 %v2665_v30, %v2598_v24  ;;  %v105_v38 = vrot.slane %v103_v27, 4  ;;  %v108_v39 = vrot.slane %v106_v28, 5  ;;  %46 = vst.msk [vmem:[#allocation2 + $0x20] sm:$0xf] %vm38_vm0, %v44_v33  ;;  %v2669_v24 = vld [vmem:[#allocation2 + $0x14] sm:$0xff]  }
  0x11   :  { %v2563_v37 = vld [vmem:[#allocation2 + $0x8] sm:$0xff]   ;;  %v204_v45 = vshrl.u32 %v2667_v35, 16  ;;  %v207_v46 = vshll.u32 %v2667_v35, 16  ;;  %595 = vperm.xlu1 %2690, %v51_v62  }
  0x12   :  { %487 = vmatpush.bf16.msra.mxu0 %v2346_v19  ;;  %v95_v40 = vshrl.u32 %v2563_v37, 16  ;;  %v98_v41 = vshll.u32 %v2563_v37, 16  ;;  %v133_v42 = vrot.slane %v2563_v37, 5  ;;  %v196_v43 = vshrl.u32 %v2599_v36, 16  ;;  %v2836_v13 = vld [vmem:[#allocation2 + $0x18] sm:$0xff]   ;;  %585 = vperm.xlu0 %2689, %v49_v2  }
  0x13   :  { %516 = vmatpush.bf16.msra.mxu1 %v2354_v20  ;;  %v199_v44 = vshll.u32 %v2599_v36, 16  ;;  %v2808_v51 = vor.u32 %v108_v39, %v105_v38  ;;  %v206_v56 = vrot.slane %v204_v45, 3  ;;  %v209_v57 = vrot.slane %v207_v46, 4 }
  0x14   :  { %545 = vmatpush.bf16.msra.mxu2 %v2362_v21  ;;  %v97_v49 = vrot.slane %v95_v40, 4  ;;  %v100_v50 = vrot.slane %v98_v41, 5  ;;  %v135_v52 = vsel %vm132_vm1, %v133_v42, %v134_v29  ;;  %v198_v54 = vrot.slane %v196_v43, 3  ;;  %v55_v40 = vld [vmem:[%s3228_s3 + $0x38] sm:$0xff]  ;;  %v54_v41 = vld [vmem:[%s3228_s3 + $0x30] sm:$0xff] }
  0x15   :  { %v201_v55 = vrot.slane %v199_v44, 4  ;;  %v230_v59 = vshrl.u32 %v133_v42, 16  ;;  %v233_v60 = vshll.u32 %v133_v42, 16  ;;  %v238_v61 = vshrl.u32 %v135_v52, 16 }
  0x16   :  { %488 = vmatpush.bf16.msra.mxu0 %v2345_v23  ;;  %v101_v58 = vor.u32 %v100_v50, %v97_v49  ;;  %v2820_v0 = vor.u32 %v209_v57, %v206_v56  ;;  %v241_v1 = vshll.u32 %v135_v52, 16  ;;  %v115_v27 = vshll.u32 %v2836_v13, 16 }
  0x17   :  { %517 = vmatpush.bf16.msra.mxu1 %v2353_v26  ;;  %v202_v63 = vor.u32 %v201_v55, %v198_v54  ;;  %v232_v8 = vrot.slane %v230_v59, 3  ;;  %v235_v12 = vrot.slane %v233_v60, 4  ;;  %v240_v16 = vrot.slane %v238_v61, 3  ;;  %v2848_v36 = vld [vmem:[#allocation2 + $0x20] sm:$0xff]  }
  0x18   :  { %546 = vmatpush.bf16.msra.mxu2 %v2361_v34  ;;  %v110_v5 = vsel %vm93_vm2, %v101_v58, %v2808_v51  ;;  %v213_v6 = vshrl.u32 %v101_v58, 16  ;;  %v216_v7 = vshll.u32 %v101_v58, 16  ;;  %v243_v17 = vrot.slane %v241_v1, 4  ;;  %v2670_v61 = vld [vmem:[#allocation2 + $0x1c] sm:$0xff]  }
  0x19   :  { %v221_v10 = vshrl.u32 %v110_v5, 16  ;;  %v224_v11 = vshll.u32 %v110_v5, 16  ;;  %v211_v18 = vsel %vm194_vm3, %v202_v63, %v2820_v0  ;;  %v236_v21 = vor.u32 %v235_v12, %v232_v8  ;;  %615 = vperm.xlu1 %2690, %v55_v40  }
  0x1a   :  { %489 = vmatpush.bf16.msra.mxu0 %v2344_v47  ;;  %v215_v14 = vrot.slane %v213_v6, 3  ;;  %v218_v15 = vrot.slane %v216_v7, 4  ;;  %v244_v23 = vor.u32 %v243_v17, %v240_v16  ;;  %v112_v26 = vshrl.u32 %v2836_v13, 16  ;;  %610 = vperm.xlu0 %2689, %v54_v41   ;;  %v52_v6 = vld [vmem:[%s3228_s3 + $0x20] sm:$0xff] }
  0x1b   :  { %518 = vmatpush.bf16.msra.mxu1 %v2352_v48  ;;  %v223_v19 = vrot.slane %v221_v10, 3  ;;  %v226_v20 = vrot.slane %v224_v11, 4  ;;  %v136_v30 = vrot.slane %v2836_v13, 5  ;;  %v117_v33 = vrot.slane %v115_v27, 5  ;;  %600 = vperm.xlu2 %2691, %v52_v6   ;;  %v2376_v6 = vld [vmem:[%s3225_s1 + $0x108] sm:$0xff] }
  0x1c   :  { %547 = vmatpush.bf16.msra.mxu2 %v2360_v53  ;;  %v219_v22 = vor.u32 %v218_v15, %v215_v14  ;;  %v245_v31 = vsel %vm194_vm3, %v236_v21, %v244_v23  ;;  %v114_v32 = vrot.slane %v112_v26, 4  ;;  %v247_v37 = vshrl.u32 %v2669_v24, 16 }
  0x1d   :  { %v227_v28 = vor.u32 %v226_v20, %v223_v19  ;;  %v137_v35 = vsel %vm132_vm1, %v134_v29, %v136_v30  ;;  %v250_v38 = vshll.u32 %v2669_v24, 16  ;;  %v121_v29 = vshrl.u32 %v2848_v36, 16  ;;  %v53_v19 = vld [vmem:[%s3228_s3 + $0x28] sm:$0xff] }
  0x1e   :  { %490 = vmatpush.bf16.msra.mxu0 %v2343_v3  ;;  %v118_v39 = vor.u32 %v117_v33, %v114_v32  ;;  %v265_v42 = vshrl.u32 %v137_v35, 16  ;;  %v268_v43 = vshll.u32 %v137_v35, 16  ;;  %v124_v44 = vshll.u32 %v2848_v36, 16  ;;  %v65_v3 = vld [vmem:[#allocation2 + $0x28] sm:$0x1] }
  0x1f   :  { %519 = vmatpush.bf16.msra.mxu1 %v2351_v4  ;;  %v228_v34 = vsel %vm194_vm3, %v219_v22, %v227_v28  ;;  %v249_v47 = vrot.slane %v247_v37, 3  ;;  %v252_v48 = vrot.slane %v250_v38, 4  ;;  %v123_v54 = vrot.slane %v121_v29, 4 }
  0x20   :  { %548 = vmatpush.bf16.msra.mxu2 %v2359_v9  ;;  %v119_v25 = vsel %vm93_vm2, %v2808_v51, %v118_v39  ;;  %v267_v52 = vrot.slane %v265_v42, 3  ;;  %v270_v53 = vrot.slane %v268_v43, 4  ;;  %v126_v55 = vrot.slane %v124_v44, 5 }
  0x21   :  { %491 = vmatmul.bf16.vlgmr.msra.gmra.mxu0 %v211_v18  ;;  %v256_v45 = vshrl.u32 %v119_v25, 16  ;;  %v259_v46 = vshll.u32 %v119_v25, 16  ;;  %v253_v56 = vor.u32 %v252_v48, %v249_v47  ;;  %v138_v51 = vrot.slane %v2848_v36, 5  ;;  %v2390_v48 = vld [vmem:[%s3225_s1 + $0x178] sm:$0xff] }
  0x22   :  { %520 = vmatmul.bf16.vlgmr.msra.gmra.mxu1 %v228_v34  ;;  %v271_v58 = vor.u32 %v270_v53, %v267_v52  ;;  %v127_v59 = vor.u32 %v126_v55, %v123_v54  ;;  %v274_v4 = vshrl.u32 %v2670_v61, 16  ;;  %v277_v5 = vshll.u32 %v2670_v61, 16  ;;  %v2374_v52 = vld [vmem:[%s3225_s1 + $0xf8] sm:$0xff]  ;;  %v2380_v53 = vld [vmem:[%s3225_s1 + $0x128] sm:$0xff]  ;;  %v2373_v54 = vld [vmem:[%s3225_s1 + $0xf0] sm:$0xff] }
  0x23   :  { %549 = vmatmul.bf16.vlgmr.msra.gmra.mxu2 %v245_v31  ;;  %v258_v49 = vrot.slane %v256_v45, 3  ;;  %v261_v50 = vrot.slane %v259_v46, 4  ;;  %v254_v60 = vsel %vm194_vm3, %v2820_v0, %v253_v56  ;;  %v139_v2 = vsel %vm132_vm1, %v136_v30, %v138_v51  ;;  %v2382_v0 = vld [vmem:[%s3225_s1 + $0x138] sm:$0xff]  ;;  %605 = vperm.xlu2 %2691, %v53_v19   ;;  %v2388_v55 = vld [vmem:[%s3225_s1 + $0x168] sm:$0xff] }
  0x24   :  { %v272_v63 = vsel %vm194_vm3, %v244_v23, %v271_v58  ;;  %v128_v1 = vsel %vm93_vm2, %v118_v39, %v127_v59  ;;  %v292_v9 = vshrl.u32 %v139_v2, 16  ;;  %v295_v10 = vshll.u32 %v139_v2, 16  ;;  %973 = vmatpush.bf16.msrb.mxu0 %v2382_v0  ;;  %1002 = vmatpush.bf16.msrb.mxu1 %v2390_v48  ;;  %v2370_v61 = vld [vmem:[%s3225_s1 + $0xd8] sm:$0xff]  ;;  %v2377_v2 = vld [vmem:[%s3225_s1 + $0x110] sm:$0xff]  ;;  %v2384_v0 = vld [vmem:[%s3225_s1 + $0x148] sm:$0xff] }
  0x25   :  { %v262_v57 = vor.u32 %v261_v50, %v258_v49  ;;  %v283_v7 = vshrl.u32 %v128_v1, 16  ;;  %v286_v8 = vshll.u32 %v128_v1, 16  ;;  %v130_v11 = vunpack.c.l.b16 %v65_v3  ;;  %v2381_v49 = vld [vmem:[%s3225_s1 + $0x130] sm:$0xff]  ;;  %944 = vmatpush.bf16.msra.mxu3 %v2374_v52 }
  0x26   :  { %v276_v12 = vrot.slane %v274_v4, 3  ;;  %v279_v13 = vrot.slane %v277_v5, 4  ;;  %v294_v16 = vrot.slane %v292_v9, 3  ;;  %v297_v17 = vrot.slane %v295_v10, 4  ;;  %v2389_v50 = vld [vmem:[%s3225_s1 + $0x170] sm:$0xff] }
  0x27   :  { %v263_v62 = vsel %vm194_vm3, %v227_v28, %v262_v57  ;;  %v285_v14 = vrot.slane %v283_v7, 3  ;;  %v288_v15 = vrot.slane %v286_v8, 4  ;;  %v131_v18 = vpack.c.b16 %v130_v11, %v130_v11  ;;  %v2385_v3 = vld [vmem:[%s3225_s1 + $0x150] sm:$0xff]  ;;  %v2368_v7 = vld [vmem:[%s3225_s1 + $0xc8] sm:$0xff] }
  0x28   :  { %v280_v20 = vor.u32 %v279_v13, %v276_v12  ;;  %v2454_v21 = vunpack.c.h.b16 %v2848_v36  ;;  %v298_v23 = vor.u32 %v297_v17, %v294_v16  ;;  %v310_v34 = vshrl.u32 %v127_v59, 16  ;;  %974 = vmatpush.bf16.msrb.mxu0 %v2381_v49  ;;  %1003 = vmatpush.bf16.msrb.mxu1 %v2389_v50  ;;  %v2369_v4 = vld [vmem:[%s3225_s1 + $0xd0] sm:$0xff]  ;;  %v2375_v13 = vld [vmem:[%s3225_s1 + $0x100] sm:$0xff] }
  0x29   :  { %v289_v22 = vor.u32 %v288_v15, %v285_v14  ;;  %v140_v24 = vrot.slane %v131_v18, 5  ;;  %v313_v35 = vshll.u32 %v127_v59, 16  ;;  %945 = vmatpush.bf16.msra.mxu3 %v2373_v54  ;;  %v2371_v59 = vld [vmem:[%s3225_s1 + $0xe0] sm:$0xff] }
  0x2a   :  { %v281_v26 = vsel %vm194_vm3, %v253_v56, %v280_v20  ;;  %v88_v27 = vpack.c.b16 %v2454_v21, %v2454_v21  ;;  %v299_v30 = vsel %vm194_vm3, %v271_v58, %v298_v23  ;;  %v312_v40 = vrot.slane %v310_v34, 3  ;;  %v2372_v56 = vld [vmem:[%s3225_s1 + $0xe8] sm:$0xff]  ;;  %v2387_v58 = vld [vmem:[%s3225_s1 + $0x160] sm:$0xff] }
  0x2b   :  { %v290_v28 = vsel %vm194_vm3, %v262_v57, %v289_v22  ;;  %v141_v31 = vsel %vm132_vm1, %v138_v51, %v140_v24  ;;  %v315_v41 = vrot.slane %v313_v35, 4  ;;  %v2379_v57 = vld [vmem:[%s3225_s1 + $0x120] sm:$0xff]  ;;  %v2378_v51 = vld [vmem:[%s3225_s1 + $0x118] sm:$0xff] }
  0x2c   :  { %v301_v32 = vshrl.u32 %v88_v27, 16  ;;  %v304_v33 = vshll.u32 %v88_v27, 16  ;;  %v319_v36 = vshrl.u32 %v141_v31, 16  ;;  %v322_v37 = vshll.u32 %v141_v31, 16  ;;  %975 = vmatpush.bf16.msrb.mxu0 %v2380_v53  ;;  %1004 = vmatpush.bf16.msrb.mxu1 %v2388_v55  ;;  %v2383_v14 = vld [vmem:[%s3225_s1 + $0x140] sm:$0xff] }
  0x2d   :  { %v316_v29 = vor.u32 %v315_v41, %v312_v40  ;;  %946 = vmatpush.bf16.msra.mxu3 %v2372_v56  ;;  %v2367_v16 = vld [vmem:[%s3225_s1 + $0xc0] sm:$0xff]  ;;  %v2617_v53 = vld [vmem:[#allocation3 + $0x4] sm:$0x8] }
  0x2e   :  { %v303_v38 = vrot.slane %v301_v32, 3  ;;  %v306_v39 = vrot.slane %v304_v33, 4  ;;  %v321_v42 = vrot.slane %v319_v36, 3  ;;  %v324_v43 = vrot.slane %v322_v37, 4 }
  0x2f   :  { %v317_v46 = vsel %vm194_vm3, %v289_v22, %v316_v29 }
  0x30   :  { %v307_v25 = vor.u32 %v306_v39, %v303_v38  ;;  %v325_v44 = vor.u32 %v324_v43, %v321_v42  ;;  %976 = vmatpush.bf16.msrb.mxu0 %v2379_v57  ;;  %1005 = vmatpush.bf16.msrb.mxu1 %v2387_v58 }
  0x31   :  { %496 = vmatmul.bf16.gmra.mxu0 %v254_v60  ;;  %947 = vmatpush.bf16.msra.mxu3 %v2371_v59  ;;  %v2386_v60 = vld [vmem:[%s3225_s1 + $0x158] sm:$0xff] }
  0x32   :  { %525 = vmatmul.bf16.gmra.mxu1 %v263_v62  ;;  %v308_v45 = vsel %vm194_vm3, %v280_v20, %v307_v25  ;;  %v326_v47 = vsel %vm194_vm3, %v298_v23, %v325_v44  ;;  %v2929_v62 = vld [vmem:[%s3227_s2] ss:$0 sm:$0xff] }
  0x33   :  { %554 = vmatmul.bf16.gmra.mxu2 %v272_v63 }
  0x34   :  { %977 = vmatpush.bf16.msrb.mxu0 %v2378_v51  ;;  %1006 = vmatpush.bf16.msrb.mxu1 %v2386_v60 }
  0x35   :  { %948 = vmatpush.bf16.msra.mxu3 %v2370_v61 }
  0x38   :  { %978 = vmatpush.bf16.msrb.mxu0 %v2377_v2  ;;  %1007 = vmatpush.bf16.msrb.mxu1 %v2385_v3 }
  0x39   :  { %949 = vmatpush.bf16.msra.mxu3 %v2369_v4 }
  0x3c   :  { %979 = vmatpush.bf16.msrb.mxu0 %v2376_v6  ;;  %1008 = vmatpush.bf16.msrb.mxu1 %v2384_v0 }
  0x3d   :  { %950 = vmatpush.bf16.msra.mxu3 %v2368_v7 }
  0x40   :  { %980 = vmatpush.bf16.msrb.mxu0 %v2375_v13  ;;  %1009 = vmatpush.bf16.msrb.mxu1 %v2383_v14 }
  0x41   :  { %501 = vmatmul.bf16.gmra.mxu0 %v281_v26  ;;  %951 = vmatpush.bf16.msra.mxu3 %v2367_v16 }
  0x42   :  { %530 = vmatmul.bf16.gmra.mxu1 %v290_v28 }
  0x43   :  { %559 = vmatmul.bf16.gmra.mxu2 %v299_v30 }
  0x51   :  { %506 = vmatmul.bf16.gmra.mxu0 %v308_v45 }
  0x52   :  { %535 = vmatmul.bf16.gmra.mxu1 %v317_v46 }
  0x53   :  { %564 = vmatmul.bf16.gmra.mxu2 %v326_v47 }
  0x75   :  { %v2975_v2 = vpop.permute.xlu2 %600 }
  0x7b   :  { %v2967_v35 = vpop.permute.xlu1 %590 }
  0x7c   :  { %v2950_v9 = vpop.permute.xlu0 %580 }
  0x83   :  { %v2970_v47 = vpop.permute.xlu1 %595 }
  0x84   :  { %v2962_v24 = vpop.permute.xlu0 %585 }
  0x9e   :  { %v492_v63 = vpop.f32.mrf.mxu0 }
  0x9f   :  { %v521_v1 = vpop.f32.mrf.mxu1  ;;  %v493_v5 = vadd.f32 %v2929_v62, %v492_v63 }
  0xa1   :  { %v522_v10 = vadd.f32 %v521_v1, %v493_v5 }
  0xa6   :  { %v550_v8 = vpop.f32.mrf.mxu2  ;;  %v494_v11 = vpop.f32.mrf.mxu0 }
  0xa7   :  { %v523_v12 = vpop.f32.mrf.mxu1  ;;  %v495_v15 = vadd.f32 %v2929_v62, %v494_v11  ;;  %v551_v17 = vadd.f32 %v550_v8, %v522_v10 }
  0xa9   :  { %v524_v18 = vadd.f32 %v523_v12, %v495_v15  ;;  %v570_v20 = vmax.f32 %v551_v17, 0.0 }
  0xab   :  { %v618_v27 = vmul.f32 %v2950_v9, %v570_v20 }
  0xae   :  { %v552_v19 = vpop.f32.mrf.mxu2  ;;  %v497_v22 = vpop.f32.mrf.mxu0 }
  0xaf   :  { %v553_v21 = vadd.f32 %v552_v19, %v524_v18  ;;  %v526_v23 = vpop.f32.mrf.mxu1  ;;  %v498_v28 = vadd.f32 %v2929_v62, %v497_v22 }
  0xb1   :  { %v571_v26 = vmax.f32 %v553_v21, 0.0  ;;  %v527_v33 = vadd.f32 %v526_v23, %v498_v28 }
  0xb3   :  { %v619_v30 = vmul.f32 %v2962_v24, %v571_v26  ;;  %v2983_v26 = vpop.permute.xlu2 %605 }
  0xb5   :  { %v2458_v31 = vpack.c.bf16 %v619_v30, %v618_v27 }
  0xb6   :  { %v555_v32 = vpop.f32.mrf.mxu2  ;;  %v499_v34 = vpop.f32.mrf.mxu0 }
  0xb7   :  { %2567 = vst [vmem:[#allocation3 + $0x8] sm:$0xff] %v2458_v31   ;;  %v528_v36 = vpop.f32.mrf.mxu1  ;;  %v500_v37 = vadd.f32 %v2929_v62, %v499_v34  ;;  %v556_v38 = vadd.f32 %v555_v32, %v527_v33  ;;  %v2478_v45 = vunpack.c.h.b16 %v2458_v31  ;;  %v683_v57 = vrot.slane %v2458_v31, 5 }
  0xb9   :  { %v529_v39 = vadd.f32 %v528_v36, %v500_v37  ;;  %v572_v42 = vmax.f32 %v556_v38, 0.0  ;;  %v764_v7 = vrot.slane %v683_v57, 3 }
  0xbb   :  { %v620_v49 = vmul.f32 %v2967_v35, %v572_v42 }
  0xbe   :  { %v557_v40 = vpop.f32.mrf.mxu2  ;;  %v652_v41 = vld [vmem:[#allocation3 + $0x8] sm:$0xe]  ;;  %v502_v25 = vpop.f32.mrf.mxu0 }
  0xbf   :  { %v558_v43 = vadd.f32 %v557_v40, %v529_v39  ;;  %v692_v29 = vunpack.c.l.b16 %v652_v41  ;;  %v531_v44 = vpop.f32.mrf.mxu1  ;;  %v503_v52 = vadd.f32 %v2929_v62, %v502_v25  ;;  %v2671_v54 = vld [vmem:[#allocation3 + $0x4] sm:$0xf0]  }
  0xc0   :  { %v2618_v59 = vor.u32 %v2671_v54, %v2617_v53  ;;  %v2993_v54 = vpop.permute.xlu1 %615 }
  0xc1   :  { %v573_v46 = vmax.f32 %v558_v43, 0.0  ;;  %v694_v48 = vpack.c.b16 %v2478_v45, %v692_v29  ;;  %v532_v51 = vadd.f32 %v531_v44, %v503_v52 }
  0xc2   :  { %v761_v13 = vrot.slane %v2618_v59, 3  ;;  %v2398_v59 = vld [vmem:[%s3225_s1 + $0x1b8] sm:$0xff] }
  0xc3   :  { %v621_v50 = vmul.f32 %v2970_v47, %v573_v46  ;;  %v697_v58 = vrot.slane %v694_v48, 6  ;;  %1355 = vmatpush.bf16.msrb.mxu2 %v2398_v59  ;;  %v2407_v59 = vld [vmem:[%s3225_s1 + $0x200] sm:$0xff] }
  0xc5   :  { %v2463_v55 = vpack.c.bf16 %v621_v50, %v620_v49  ;;  %v767_v10 = vrot.slane %v697_v58, 3 }
  0xc6   :  { %v560_v56 = vpop.f32.mrf.mxu2  ;;  %v504_v60 = vpop.f32.mrf.mxu0 }
  0xc7   :  { %2568 = vst [vmem:[#allocation3 + $0x10] sm:$0xff] %v2463_v55   ;;  %v684_v61 = vrot.slane %v2463_v55, 5  ;;  %v698_v63 = vrot.slane %v2463_v55, 6  ;;  %v2481_v1 = vunpack.c.l.b16 %v2463_v55  ;;  %v533_v3 = vpop.f32.mrf.mxu1  ;;  %v505_v4 = vadd.f32 %v2929_v62, %v504_v60  ;;  %v2995_v55 = vpop.permute.xlu0 %610 }
  0xc8   :  { %v561_v12 = vadd.f32 %v560_v56, %v532_v51  ;;  %v2406_v51 = vld [vmem:[%s3225_s1 + $0x1f8] sm:$0xff] }
  0xc9   :  { %v685_v5 = vsel %vm132_vm1, %v683_v57, %v684_v61  ;;  %v699_v6 = vsel %vm696_vm4, %v697_v58, %v698_v63  ;;  %v673_v0 = vpack.c.b16 %v2481_v1, %v2478_v45  ;;  %v534_v17 = vadd.f32 %v533_v3, %v505_v4  ;;  %1384 = vmatpush.bf16.msrb.mxu3 %v2406_v51 }
  0xca   :  { %v765_v8 = vrot.slane %v685_v5, 3  ;;  %v768_v11 = vrot.slane %v699_v6, 3  ;;  %v574_v20 = vmax.f32 %v561_v12, 0.0 }
  0xcb   :  { %v762_v14 = vrot.slane %v673_v0, 3 }
  0xcc   :  { %v766_v15 = vsel %vm760_vm5, %v764_v7, %v765_v8  ;;  %v769_v16 = vsel %vm760_vm5, %v767_v10, %v768_v11  ;;  %v622_v28 = vmul.f32 %v2975_v2, %v574_v20 }
  0xcd   :  { %981 = vmatmul.bf16.vlgmr.msrb.gmra.mxu0 %v766_v15  ;;  %1010 = vmatmul.bf16.vlgmr.msrb.gmra.mxu1 %v769_v16  ;;  %v763_v18 = vsel %vm760_vm5, %v761_v13, %v762_v14 }
  0xce   :  { %v562_v19 = vpop.f32.mrf.mxu2  ;;  %952 = vmatmul.bf16.vlgmr.msra.gmra.mxu3 %v763_v18  ;;  %v507_v22 = vpop.f32.mrf.mxu0 }
  0xcf   :  { %v563_v21 = vadd.f32 %v562_v19, %v534_v17  ;;  %v536_v27 = vpop.f32.mrf.mxu1  ;;  %v508_v31 = vadd.f32 %v2929_v62, %v507_v22 }
  0xd1   :  { %v575_v23 = vmax.f32 %v563_v21, 0.0  ;;  %v537_v34 = vadd.f32 %v536_v27, %v508_v31  ;;  %v2414_v31 = vld [vmem:[%s3225_s1 + $0x238] sm:$0xff] }
  0xd2   :  { %1413 = vmatpush.bf16.msra.mxu0 %v2414_v31 }
  0xd3   :  { %v623_v30 = vmul.f32 %v2983_v26, %v575_v23 }
  0xd5   :  { %v2468_v32 = vpack.c.bf16 %v623_v30, %v622_v28  ;;  %v2397_v28 = vld [vmem:[%s3225_s1 + $0x1b0] sm:$0xff] }
  0xd6   :  { %v565_v33 = vpop.f32.mrf.mxu2  ;;  %v509_v36 = vpop.f32.mrf.mxu0  ;;  %v2405_v30 = vld [vmem:[%s3225_s1 + $0x1f0] sm:$0xff]  ;;  %1356 = vmatpush.bf16.msrb.mxu2 %v2397_v28 }
  0xd7   :  { %2569 = vst [vmem:[#allocation3 + $0x18] sm:$0xff] %v2468_v32   ;;  %v686_v37 = vrot.slane %v2468_v32, 5  ;;  %v700_v38 = vrot.slane %v2468_v32, 6  ;;  %v510_v39 = vadd.f32 %v2929_v62, %v509_v36  ;;  %v566_v25 = vadd.f32 %v565_v33, %v537_v34  ;;  %v538_v29 = vpop.f32.mrf.mxu1  ;;  %1385 = vmatpush.bf16.msrb.mxu3 %v2405_v30  ;;  %v2396_v32 = vld [vmem:[%s3225_s1 + $0x1a8] sm:$0xff]  ;;  %v2413_v34 = vld [vmem:[%s3225_s1 + $0x230] sm:$0xff] }
  0xd8   :  { %v2404_v33 = vld [vmem:[%s3225_s1 + $0x1e8] sm:$0xff]  ;;  %1414 = vmatpush.bf16.msra.mxu0 %v2413_v34 }
  0xd9   :  { %v687_v40 = vsel %vm132_vm1, %v684_v61, %v686_v37  ;;  %v701_v41 = vsel %vm696_vm4, %v698_v63, %v700_v38  ;;  %v539_v46 = vadd.f32 %v538_v29, %v510_v39  ;;  %v576_v50 = vmax.f32 %v566_v25, 0.0  ;;  %v653_v61 = vld [vmem:[#allocation3 + $0x28] sm:$0x1]  ;;  %v2412_v36 = vld [vmem:[%s3225_s1 + $0x228] sm:$0xff]  ;;  %v2411_v39 = vld [vmem:[%s3225_s1 + $0x220] sm:$0xff] }
  0xda   :  { %v772_v42 = vrot.slane %v687_v40, 3  ;;  %v774_v43 = vrot.slane %v701_v41, 3  ;;  %v693_v5 = vunpack.c.l.b16 %v653_v61  ;;  %1357 = vmatpush.bf16.msrb.mxu2 %v2396_v32  ;;  %v2394_v25 = vld [vmem:[%s3225_s1 + $0x198] sm:$0xff] }
  0xdb   :  { %v624_v57 = vmul.f32 %v2995_v55, %v576_v50  ;;  %1386 = vmatpush.bf16.msrb.mxu3 %v2404_v33  ;;  %v2402_v29 = vld [vmem:[%s3225_s1 + $0x1d8] sm:$0xff]  ;;  %v2393_v50 = vld [vmem:[%s3225_s1 + $0x190] sm:$0xff] }
  0xdc   :  { %v773_v44 = vsel %vm760_vm5, %v765_v8, %v772_v42  ;;  %v775_v45 = vsel %vm760_vm5, %v768_v11, %v774_v43  ;;  %v695_v10 = vpack.c.b16 %v693_v5, %v693_v5  ;;  %1415 = vmatpush.bf16.msra.mxu0 %v2412_v36 }
  0xdd   :  { %986 = vmatmul.bf16.gmra.mxu0 %v773_v44  ;;  %1015 = vmatmul.bf16.gmra.mxu1 %v775_v45  ;;  %v2409_v45 = vld [vmem:[%s3225_s1 + $0x210] sm:$0xff] }
  0xde   :  { %v567_v48 = vpop.f32.mrf.mxu2  ;;  %v2674_v49 = vld [vmem:[#allocation3 + $0x14] sm:$0xff]   ;;  %v704_v13 = vrot.slane %v695_v10, 6 }
  0xdf   :  { %v568_v52 = vadd.f32 %v567_v48, %v539_v46  ;;  %v770_v62 = vrot.slane %v2674_v49, 3  ;;  %v2401_v49 = vld [vmem:[%s3225_s1 + $0x1d0] sm:$0xff] }
  0xe0   :  { %1416 = vmatpush.bf16.msra.mxu0 %v2411_v39 }
  0xe1   :  { %v577_v53 = vmax.f32 %v568_v52, 0.0  ;;  %v771_v56 = vsel %vm760_vm5, %v762_v14, %v770_v62  ;;  %v2408_v52 = vld [vmem:[%s3225_s1 + $0x208] sm:$0xff] }
  0xe2   :  { %957 = vmatmul.bf16.gmra.mxu3 %v771_v56  ;;  %v2400_v56 = vld [vmem:[%s3225_s1 + $0x1c8] sm:$0xff] }
  0xe3   :  { %v625_v58 = vmul.f32 %v2993_v54, %v577_v53 }
  0xe5   :  { %v2473_v60 = vpack.c.bf16 %v625_v58, %v624_v57  ;;  %v2392_v58 = vld [vmem:[%s3225_s1 + $0x188] sm:$0xff] }
  0xe7   :  { %2570 = vst [vmem:[#allocation3 + $0x20] sm:$0xff] %v2473_v60   ;;  %v688_v63 = vrot.slane %v2473_v60, 5  ;;  %v702_v1 = vrot.slane %v2473_v60, 6 }
  0xe9   :  { %v689_v3 = vsel %vm132_vm1, %v686_v37, %v688_v63  ;;  %v703_v4 = vsel %vm696_vm4, %v700_v38, %v702_v1  ;;  %v705_v16 = vsel %vm696_vm4, %v702_v1, %v704_v13  ;;  %v784_v18 = vrot.slane %v688_v63, 3  ;;  %v2395_v37 = vld [vmem:[%s3225_s1 + $0x1a0] sm:$0xff] }
  0xea   :  { %v778_v6 = vrot.slane %v689_v3, 3  ;;  %v780_v0 = vrot.slane %v703_v4, 3  ;;  %v786_v19 = vrot.slane %v705_v16, 3  ;;  %v2403_v38 = vld [vmem:[%s3225_s1 + $0x1e0] sm:$0xff]  ;;  %1358 = vmatpush.bf16.msrb.mxu2 %v2395_v37 }
  0xeb   :  { %1387 = vmatpush.bf16.msrb.mxu3 %v2403_v38  ;;  %v2399_v63 = vld [vmem:[%s3225_s1 + $0x1c0] sm:$0xff] }
  0xec   :  { %v779_v7 = vsel %vm760_vm5, %v772_v42, %v778_v6  ;;  %v781_v8 = vsel %vm760_vm5, %v774_v43, %v780_v0  ;;  %v785_v21 = vsel %vm760_vm5, %v778_v6, %v784_v18  ;;  %v787_v22 = vsel %vm760_vm5, %v780_v0, %v786_v19  ;;  %v2410_v42 = vld [vmem:[%s3225_s1 + $0x218] sm:$0xff]  ;;  %v3051_v43 = vld [vmem:[%s3227_s2 + $0x1] ss:$0 sm:$0xff]  ;;  %v2631_v38 = vld [vmem:[#allocation2 + $0x4] sm:$0xc] }
  0xed   :  { %991 = vmatmul.bf16.gmra.mxu0 %v779_v7  ;;  %1020 = vmatmul.bf16.gmra.mxu1 %v781_v8  ;;  %v2391_v1 = vld [vmem:[%s3225_s1 + $0x180] sm:$0xff] }
  0xee   :  { %v2675_v11 = vld [vmem:[#allocation3 + $0x1c] sm:$0xff]   ;;  %v650_v15 = vld [vmem:[#allocation3 + $0x24] sm:$0x7]  ;;  %1417 = vmatpush.bf16.msra.mxu0 %v2410_v42  ;;  %1359 = vmatpush.bf16.msrb.mxu2 %v2394_v25 }
  0xef   :  { %v776_v12 = vrot.slane %v2675_v11, 3  ;;  %v671_v17 = vunpack.c.l.b16 %v650_v15  ;;  %1388 = vmatpush.bf16.msrb.mxu3 %v2402_v29 }
  0xf1   :  { %v777_v14 = vsel %vm760_vm5, %v770_v62, %v776_v12  ;;  %v676_v20 = vpack.c.b16 %v671_v17, %v671_v17 }
  0xf2   :  { %962 = vmatmul.bf16.gmra.mxu3 %v777_v14  ;;  %1418 = vmatpush.bf16.msra.mxu0 %v2409_v45 }
  0xf3   :  { %v782_v23 = vrot.slane %v676_v20, 3  ;;  %1389 = vmatpush.bf16.msrb.mxu3 %v2401_v49  ;;  %1360 = vmatpush.bf16.msrb.mxu2 %v2393_v50 }
  0xf5   :  { %v783_v27 = vsel %vm760_vm5, %v776_v12, %v782_v23 }
  0xf6   :  { %1419 = vmatpush.bf16.msra.mxu0 %v2408_v52 }
  0xf7   :  { %1390 = vmatpush.bf16.msrb.mxu3 %v2400_v56  ;;  %1361 = vmatpush.bf16.msrb.mxu2 %v2392_v58 }
  0xfa   :  { %1420 = vmatpush.bf16.msra.mxu0 %v2407_v59 }
  0xfb   :  { %1391 = vmatpush.bf16.msrb.mxu3 %v2399_v63  ;;  %1362 = vmatpush.bf16.msrb.mxu2 %v2391_v1 }
  0xfd   :  { %996 = vmatmul.bf16.gmra.mxu0 %v785_v21  ;;  %1025 = vmatmul.bf16.gmra.mxu1 %v787_v22 }
 0x102   :  { %967 = vmatmul.bf16.gmra.mxu3 %v783_v27 }
 0x14a   :  { %v982_v40 = vpop.f32.mrf.mxu0  ;;  %v1011_v41 = vpop.f32.mrf.mxu1 }
 0x151   :  { %v953_v44 = vpop.f32.mrf.mxu3 }
 0x152   :  { %v954_v46 = vadd.f32 %v3051_v43, %v953_v44  ;;  %v984_v48 = vpop.f32.mrf.mxu0  ;;  %v1013_v53 = vpop.f32.mrf.mxu1 }
 0x154   :  { %v983_v62 = vadd.f32 %v982_v40, %v954_v46 }
 0x156   :  { %v1012_v51 = vadd.f32 %v1011_v41, %v983_v62 }
 0x158   :  { %v1031_v3 = vmax.f32 %v1012_v51, 0.0 }
 0x159   :  { %v955_v57 = vpop.f32.mrf.mxu3 }
 0x15a   :  { %v956_v60 = vadd.f32 %v3051_v43, %v955_v57  ;;  %v987_v5 = vpop.f32.mrf.mxu0  ;;  %v1016_v0 = vpop.f32.mrf.mxu1  ;;  %v1039_v7 = vmul.f32 %v1031_v3, %v2950_v9 }
 0x15c   :  { %v985_v61 = vadd.f32 %v984_v48, %v956_v60 }
 0x15e   :  { %v1014_v4 = vadd.f32 %v1013_v53, %v985_v61 }
 0x160   :  { %v1032_v6 = vmax.f32 %v1014_v4, 0.0 }
 0x162   :  { %v1040_v8 = vmul.f32 %v1032_v6, %v2962_v24  ;;  %v989_v13 = vpop.f32.mrf.mxu0  ;;  %v1018_v14 = vpop.f32.mrf.mxu1 }
 0x164   :  { %v2494_v10 = vpack.c.bf16 %v1040_v8, %v1039_v7 }
 0x165   :  { %v958_v11 = vpop.f32.mrf.mxu3 }
 0x166   :  { %2575 = vst [vmem:[#allocation2 + $0x8] sm:$0xff] %v2494_v10   ;;  %v959_v12 = vadd.f32 %v3051_v43, %v958_v11  ;;  %v2514_v30 = vunpack.c.h.b16 %v2494_v10  ;;  %v1104_v42 = vrot.slane %v2494_v10, 6 }
 0x168   :  { %v988_v15 = vadd.f32 %v987_v5, %v959_v12  ;;  %v1175_v56 = vrot.slane %v1104_v42, 2 }
 0x16a   :  { %v1017_v17 = vadd.f32 %v1016_v0, %v988_v15  ;;  %v992_v21 = vpop.f32.mrf.mxu0  ;;  %v1021_v28 = vpop.f32.mrf.mxu1 }
 0x16c   :  { %v1033_v23 = vmax.f32 %v1017_v17, 0.0 }
 0x16d   :  { %v960_v16 = vpop.f32.mrf.mxu3  ;;  %v1073_v19 = vld [vmem:[#allocation2 + $0x8] sm:$0xc] }
 0x16e   :  { %v961_v18 = vadd.f32 %v3051_v43, %v960_v16  ;;  %v1113_v22 = vunpack.c.l.b16 %v1073_v19  ;;  %v1041_v34 = vmul.f32 %v1033_v23, %v2967_v35  ;;  %v2676_v39 = vld [vmem:[#allocation2 + $0x4] sm:$0xf0]  }
 0x16f   :  { %v2632_v25 = vor.u32 %v2676_v39, %v2631_v38  ;;  %v2438_v39 = vld [vmem:[%s3225_s1 + $0x2f8] sm:$0xff] }
 0x170   :  { %v990_v20 = vadd.f32 %v989_v13, %v961_v18  ;;  %v1115_v33 = vpack.c.b16 %v2514_v30, %v1113_v22  ;;  %1770 = vmatpush.bf16.msra.mxu3 %v2438_v39 }
 0x171   :  { %v1172_v51 = vrot.slane %v2632_v25, 2 }
 0x172   :  { %v1019_v27 = vadd.f32 %v1018_v14, %v990_v20  ;;  %v1178_v41 = vrot.slane %v1115_v33, 2  ;;  %v994_v48 = vpop.f32.mrf.mxu0  ;;  %v1023_v62 = vpop.f32.mrf.mxu1 }
 0x174   :  { %v1034_v31 = vmax.f32 %v1019_v27, 0.0 }
 0x175   :  { %v963_v32 = vpop.f32.mrf.mxu3 }
 0x176   :  { %v1042_v36 = vmul.f32 %v1034_v31, %v2970_v47  ;;  %v964_v37 = vadd.f32 %v3051_v43, %v963_v32 }
 0x178   :  { %v2499_v40 = vpack.c.bf16 %v1042_v36, %v1041_v34  ;;  %v993_v29 = vadd.f32 %v992_v21, %v964_v37 }
 0x17a   :  { %2576 = vst [vmem:[#allocation2 + $0x10] sm:$0xff] %v2499_v40   ;;  %v1179_v44 = vrot.slane %v2499_v40, 2  ;;  %v1105_v45 = vrot.slane %v2499_v40, 6  ;;  %v2517_v46 = vunpack.c.l.b16 %v2499_v40  ;;  %v1022_v58 = vadd.f32 %v1021_v28, %v993_v29  ;;  %v997_v6 = vpop.f32.mrf.mxu0  ;;  %v1026_v11 = vpop.f32.mrf.mxu1  ;;  %v2422_v40 = vld [vmem:[%s3225_s1 + $0x278] sm:$0xff] }
 0x17b   :  { %1720 = vmatpush.bf16.msra.mxu1 %v2422_v40 }
 0x17c   :  { %v1180_v49 = vsel %vm1171_vm6, %v1178_v41, %v1179_v44  ;;  %v1106_v50 = vsel %vm696_vm4, %v1104_v42, %v1105_v45  ;;  %v1094_v52 = vpack.c.b16 %v2517_v46, %v2514_v30  ;;  %v1035_v3 = vmax.f32 %v1022_v58, 0.0  ;;  %v2429_v42 = vld [vmem:[%s3225_s1 + $0x2b0] sm:$0xff] }
 0x17d   :  { %v965_v53 = vpop.f32.mrf.mxu3  ;;  %1421 = vmatmul.bf16.vlgmr.msra.gmra.mxu0 %v1180_v49  ;;  %v1176_v57 = vrot.slane %v1106_v50, 2 }
 0x17e   :  { %v966_v59 = vadd.f32 %v3051_v43, %v965_v53  ;;  %v1173_v60 = vrot.slane %v1094_v52, 2  ;;  %v1043_v7 = vmul.f32 %v1035_v3, %v2975_v2 }
 0x17f   :  { %v1177_v61 = vsel %vm1171_vm6, %v1175_v56, %v1176_v57 }
 0x180   :  { %v995_v63 = vadd.f32 %v994_v48, %v966_v59  ;;  %1392 = vmatmul.bf16.vlgmr.msrb.gmra.mxu3 %v1177_v61  ;;  %v1174_v1 = vsel %vm1171_vm6, %v1172_v51, %v1173_v60  ;;  %v1074_v48 = vld [vmem:[#allocation2 + $0x28] sm:$0x3] }
 0x181   :  { %1363 = vmatmul.bf16.vlgmr.msrb.gmra.mxu2 %v1174_v1  ;;  %v1114_v50 = vunpack.c.l.b16 %v1074_v48 }
 0x182   :  { %v1024_v4 = vadd.f32 %v1023_v62, %v995_v63  ;;  %v999_v22 = vpop.f32.mrf.mxu0  ;;  %v1028_v28 = vpop.f32.mrf.mxu1 }
 0x183   :  { %v1116_v53 = vpack.c.b16 %v1114_v50, %v1114_v50 }
 0x184   :  { %v1036_v5 = vmax.f32 %v1024_v4, 0.0  ;;  %v2437_v4 = vld [vmem:[%s3225_s1 + $0x2f0] sm:$0xff] }
 0x185   :  { %v968_v0 = vpop.f32.mrf.mxu3  ;;  %v1197_v58 = vrot.slane %v1116_v53, 2  ;;  %1771 = vmatpush.bf16.msra.mxu3 %v2437_v4 }
 0x186   :  { %v1044_v8 = vmul.f32 %v1036_v5, %v2983_v26  ;;  %v969_v10 = vadd.f32 %v3051_v43, %v968_v0  ;;  %v2421_v5 = vld [vmem:[%s3225_s1 + $0x270] sm:$0xff]  ;;  %v2436_v0 = vld [vmem:[%s3225_s1 + $0x2e8] sm:$0xff] }
 0x187   :  { %1721 = vmatpush.bf16.msra.mxu1 %v2421_v5 }
 0x188   :  { %v2504_v12 = vpack.c.bf16 %v1044_v8, %v1043_v7  ;;  %v998_v13 = vadd.f32 %v997_v6, %v969_v10  ;;  %v2428_v6 = vld [vmem:[%s3225_s1 + $0x2a8] sm:$0xff]  ;;  %v2427_v7 = vld [vmem:[%s3225_s1 + $0x2a0] sm:$0xff]  ;;  %v2426_v8 = vld [vmem:[%s3225_s1 + $0x298] sm:$0xff] }
 0x189   :  { %1772 = vmatpush.bf16.msra.mxu3 %v2436_v0  ;;  %v2420_v10 = vld [vmem:[%s3225_s1 + $0x268] sm:$0xff] }
 0x18a   :  { %2577 = vst [vmem:[#allocation2 + $0x18] sm:$0xff] %v2504_v12   ;;  %v1107_v14 = vrot.slane %v2504_v12, 6  ;;  %v1185_v15 = vrot.slane %v2504_v12, 2  ;;  %v1027_v20 = vadd.f32 %v1026_v11, %v998_v13  ;;  %v2425_v11 = vld [vmem:[%s3225_s1 + $0x290] sm:$0xff]  ;;  %v2435_v12 = vld [vmem:[%s3225_s1 + $0x2e0] sm:$0xff] }
 0x18b   :  { %1722 = vmatpush.bf16.msra.mxu1 %v2420_v10  ;;  %v2419_v13 = vld [vmem:[%s3225_s1 + $0x260] sm:$0xff] }
 0x18c   :  { %v1186_v16 = vsel %vm1171_vm6, %v1179_v44, %v1185_v15  ;;  %v1108_v17 = vsel %vm696_vm4, %v1105_v45, %v1107_v14  ;;  %v1037_v31 = vmax.f32 %v1027_v20, 0.0  ;;  %v2415_v20 = vld [vmem:[%s3225_s1 + $0x240] sm:$0xff] }
 0x18d   :  { %v970_v18 = vpop.f32.mrf.mxu3  ;;  %1426 = vmatmul.bf16.gmra.mxu0 %v1186_v16  ;;  %v1183_v19 = vrot.slane %v1108_v17, 2  ;;  %1773 = vmatpush.bf16.msra.mxu3 %v2435_v12  ;;  %v2423_v16 = vld [vmem:[%s3225_s1 + $0x280] sm:$0xff]  ;;  %v2417_v17 = vld [vmem:[%s3225_s1 + $0x250] sm:$0xff] }
 0x18e   :  { %v971_v21 = vadd.f32 %v3051_v43, %v970_v18  ;;  %v1045_v37 = vmul.f32 %v1037_v31, %v2995_v55  ;;  %v2430_v43 = vld [vmem:[%s3225_s1 + $0x2b8] sm:$0xff] }
 0x18f   :  { %v1184_v23 = vsel %vm1171_vm6, %v1176_v57, %v1183_v19  ;;  %1745 = vmatpush.bf16.msra.mxu2 %v2430_v43  ;;  %1723 = vmatpush.bf16.msra.mxu1 %v2419_v13  ;;  %v2434_v18 = vld [vmem:[%s3225_s1 + $0x2d8] sm:$0xff] }
 0x190   :  { %v1000_v27 = vadd.f32 %v999_v22, %v971_v21  ;;  %1397 = vmatmul.bf16.gmra.mxu3 %v1184_v23  ;;  %v3183_v22 = vld [vmem:[%s3227_s2 + $0x2] ss:$0 sm:$0xff]  ;;  %v2433_v23 = vld [vmem:[%s3225_s1 + $0x2d0] sm:$0xff] }
 0x191   :  { %v2679_v30 = vld [vmem:[#allocation2 + $0x14] sm:$0xff]   ;;  %1774 = vmatpush.bf16.msra.mxu3 %v2434_v18 }
 0x192   :  { %v1029_v32 = vadd.f32 %v1028_v28, %v1000_v27  ;;  %v1181_v33 = vrot.slane %v2679_v30, 2 }
 0x193   :  { %1746 = vmatpush.bf16.msra.mxu2 %v2429_v42 }
 0x194   :  { %v1038_v34 = vmax.f32 %v1029_v32, 0.0  ;;  %v1182_v36 = vsel %vm1171_vm6, %v1173_v60, %v1181_v33 }
 0x195   :  { %1368 = vmatmul.bf16.gmra.mxu2 %v1182_v36  ;;  %1775 = vmatpush.bf16.msra.mxu3 %v2433_v23 }
 0x196   :  { %v1046_v38 = vmul.f32 %v1038_v34, %v2993_v54 }
 0x197   :  { %1747 = vmatpush.bf16.msra.mxu2 %v2428_v6 }
 0x198   :  { %v2509_v41 = vpack.c.bf16 %v1046_v38, %v1045_v37  ;;  %v2432_v38 = vld [vmem:[%s3225_s1 + $0x2c8] sm:$0xff] }
 0x199   :  { %1776 = vmatpush.bf16.msra.mxu3 %v2432_v38 }
 0x19a   :  { %2578 = vst [vmem:[#allocation2 + $0x20] sm:$0xff] %v2509_v41   ;;  %v1109_v25 = vrot.slane %v2509_v41, 6  ;;  %v1191_v29 = vrot.slane %v2509_v41, 2  ;;  %v2431_v41 = vld [vmem:[%s3225_s1 + $0x2c0] sm:$0xff] }
 0x19b   :  { %1748 = vmatpush.bf16.msra.mxu2 %v2427_v7 }
 0x19c   :  { %v1192_v44 = vsel %vm1171_vm6, %v1185_v15, %v1191_v29  ;;  %v1110_v45 = vsel %vm696_vm4, %v1107_v14, %v1109_v25  ;;  %v1195_v51 = vrot.slane %v1109_v25, 2  ;;  %v1198_v60 = vsel %vm1171_vm6, %v1191_v29, %v1197_v58  ;;  %v2424_v14 = vld [vmem:[%s3225_s1 + $0x288] sm:$0xff]  ;;  %v2418_v15 = vld [vmem:[%s3225_s1 + $0x258] sm:$0xff] }
 0x19d   :  { %1431 = vmatmul.bf16.gmra.mxu0 %v1192_v44  ;;  %v1189_v46 = vrot.slane %v1110_v45, 2  ;;  %1724 = vmatpush.bf16.msra.mxu1 %v2418_v15 }
 0x19e   :  { %1777 = vmatpush.bf16.msra.mxu3 %v2431_v41 }
 0x19f   :  { %v1190_v49 = vsel %vm1171_vm6, %v1183_v19, %v1189_v46  ;;  %v1196_v63 = vsel %vm1171_vm6, %v1189_v46, %v1195_v51  ;;  %1749 = vmatpush.bf16.msra.mxu2 %v2426_v8  ;;  %v2416_v19 = vld [vmem:[%s3225_s1 + $0x248] sm:$0xff] }
 0x1a0   :  { %1402 = vmatmul.bf16.gmra.mxu3 %v1190_v49 }
 0x1a1   :  { %v2680_v52 = vld [vmem:[#allocation2 + $0x1c] sm:$0xff]   ;;  %v1071_v57 = vld [vmem:[#allocation2 + $0x24] sm:$0x3]  ;;  %1725 = vmatpush.bf16.msra.mxu1 %v2417_v17 }
 0x1a2   :  { %v1187_v62 = vrot.slane %v2680_v52, 2  ;;  %v1092_v59 = vunpack.c.l.b16 %v1071_v57 }
 0x1a3   :  { %1750 = vmatpush.bf16.msra.mxu2 %v2425_v11 }
 0x1a4   :  { %v1188_v56 = vsel %vm1171_vm6, %v1181_v33, %v1187_v62  ;;  %v1097_v61 = vpack.c.b16 %v1092_v59, %v1092_v59 }
 0x1a5   :  { %1373 = vmatmul.bf16.gmra.mxu2 %v1188_v56  ;;  %1726 = vmatpush.bf16.msra.mxu1 %v2416_v19 }
 0x1a6   :  { %v1193_v1 = vrot.slane %v1097_v61, 2 }
 0x1a7   :  { %1751 = vmatpush.bf16.msra.mxu2 %v2424_v14 }
 0x1a8   :  { %v1194_v3 = vsel %vm1171_vm6, %v1187_v62, %v1193_v1 }
 0x1a9   :  { %1727 = vmatpush.bf16.msra.mxu1 %v2415_v20 }
 0x1ab   :  { %1752 = vmatpush.bf16.msra.mxu2 %v2423_v16 }
 0x1ad   :  { %1436 = vmatmul.bf16.gmra.mxu0 %v1198_v60 }
 0x1b0   :  { %1407 = vmatmul.bf16.gmra.mxu3 %v1196_v63 }
 0x1b5   :  { %1378 = vmatmul.bf16.gmra.mxu2 %v1194_v3 }
 0x1fa   :  { %v1422_v21 = vpop.f32.mrf.mxu0 }
 0x202   :  { %v1424_v31 = vpop.f32.mrf.mxu0 }
 0x203   :  { %v1393_v27 = vpop.f32.mrf.mxu3 }
 0x204   :  { %v1364_v28 = vpop.f32.mrf.mxu2 }
 0x205   :  { %v1365_v30 = vadd.f32 %v3183_v22, %v1364_v28 }
 0x207   :  { %v1394_v32 = vadd.f32 %v1393_v27, %v1365_v30 }
 0x209   :  { %v1423_v36 = vadd.f32 %v1422_v21, %v1394_v32 }
 0x20a   :  { %v1427_v42 = vpop.f32.mrf.mxu0 }
 0x20b   :  { %v1395_v33 = vpop.f32.mrf.mxu3  ;;  %v1442_v39 = vmax.f32 %v1423_v36, 0.0 }
 0x20c   :  { %v1366_v34 = vpop.f32.mrf.mxu2 }
 0x20d   :  { %v1367_v37 = vadd.f32 %v3183_v22, %v1366_v34  ;;  %v1450_v44 = vmul.f32 %v1442_v39, %v2950_v9 }
 0x20f   :  { %v1396_v43 = vadd.f32 %v1395_v33, %v1367_v37 }
 0x211   :  { %v1425_v40 = vadd.f32 %v1424_v31, %v1396_v43 }
 0x212   :  { %v1429_v52 = vpop.f32.mrf.mxu0 }
 0x213   :  { %v1443_v25 = vmax.f32 %v1425_v40, 0.0  ;;  %v1398_v29 = vpop.f32.mrf.mxu3 }
 0x215   :  { %v1451_v45 = vmul.f32 %v1443_v25, %v2962_v24 }
 0x217   :  { %v2530_v46 = vpack.c.bf16 %v1451_v45, %v1450_v44 }
 0x218   :  { %v1369_v48 = vpop.f32.mrf.mxu2 }
 0x219   :  { %2583 = vst [vmem:[#allocation3 + $0x8] sm:$0xff] %v2530_v46   ;;  %1753 = vmatmul.bf16.vlgmr.msra.gmra.mxu2 %v2530_v46  ;;  %v1370_v49 = vadd.f32 %v3183_v22, %v1369_v48 }
 0x21a   :  { %v1432_v24 = vpop.f32.mrf.mxu0 }
 0x21b   :  { %v1400_v50 = vpop.f32.mrf.mxu3  ;;  %v1399_v62 = vadd.f32 %v1398_v29, %v1370_v49  ;;  %v2695_v29 = vld [vmem:[%s3227_s2 + $0x3] ss:$0 sm:$0xff] }
 0x21d   :  { %v1428_v57 = vadd.f32 %v1427_v42, %v1399_v62 }
 0x21f   :  { %v1444_v9 = vmax.f32 %v1428_v57, 0.0 }
 0x220   :  { %v2682_v53 = vld [vmem:[#allocation3 + $0x4] sm:$0xff]   ;;  %v1371_v56 = vpop.f32.mrf.mxu2 }
 0x221   :  { %v1372_v58 = vadd.f32 %v3183_v22, %v1371_v56  ;;  %1728 = vmatmul.bf16.vlgmr.msra.gmra.mxu1 %v2682_v53  ;;  %v1452_v1 = vmul.f32 %v1444_v9, %v2967_v35 }
 0x222   :  { %v1434_v7 = vpop.f32.mrf.mxu0 }
 0x223   :  { %v1401_v59 = vadd.f32 %v1400_v50, %v1372_v58  ;;  %v1403_v51 = vpop.f32.mrf.mxu3 }
 0x225   :  { %v1430_v60 = vadd.f32 %v1429_v52, %v1401_v59 }
 0x227   :  { %v1445_v61 = vmax.f32 %v1430_v60, 0.0 }
 0x228   :  { %v1374_v63 = vpop.f32.mrf.mxu2 }
 0x229   :  { %v1453_v3 = vmul.f32 %v1445_v61, %v2970_v47  ;;  %v1375_v4 = vadd.f32 %v3183_v22, %v1374_v63 }
 0x22a   :  { %v1437_v20 = vpop.f32.mrf.mxu0 }
 0x22b   :  { %v2535_v5 = vpack.c.bf16 %v1453_v3, %v1452_v1  ;;  %v1404_v6 = vadd.f32 %v1403_v51, %v1375_v4  ;;  %v1405_v0 = vpop.f32.mrf.mxu3 }
 0x22d   :  { %2584 = vst [vmem:[#allocation3 + $0x10] sm:$0xff] %v2535_v5   ;;  %1758 = vmatmul.bf16.gmra.mxu2 %v2535_v5  ;;  %v1433_v10 = vadd.f32 %v1432_v24, %v1404_v6 }
 0x22f   :  { %v1446_v14 = vmax.f32 %v1433_v10, 0.0 }
 0x230   :  { %v1376_v8 = vpop.f32.mrf.mxu2 }
 0x231   :  { %v1377_v11 = vadd.f32 %v3183_v22, %v1376_v8  ;;  %v1454_v17 = vmul.f32 %v1446_v14, %v2975_v2 }
 0x232   :  { %v1439_v33 = vpop.f32.mrf.mxu0 }
 0x233   :  { %v1406_v12 = vadd.f32 %v1405_v0, %v1377_v11  ;;  %v1408_v47 = vpop.f32.mrf.mxu3 }
 0x234   :  { %v2684_v13 = vld [vmem:[#allocation3 + $0xc] sm:$0xff]  }
 0x235   :  { %v1435_v15 = vadd.f32 %v1434_v7, %v1406_v12  ;;  %1733 = vmatmul.bf16.gmra.mxu1 %v2684_v13  ;;  %1778 = vmatmul.bf16.vlgmr.msra.gmra.mxu3 %v2684_v13 }
 0x237   :  { %v1447_v35 = vmax.f32 %v1435_v15, 0.0 }
 0x238   :  { %v1379_v16 = vpop.f32.mrf.mxu2 }
 0x239   :  { %v1455_v18 = vmul.f32 %v1447_v35, %v2983_v26  ;;  %v1380_v19 = vadd.f32 %v3183_v22, %v1379_v16 }
 0x23b   :  { %v2540_v21 = vpack.c.bf16 %v1455_v18, %v1454_v17  ;;  %v1409_v23 = vadd.f32 %v1408_v47, %v1380_v19  ;;  %v1410_v31 = vpop.f32.mrf.mxu3 }
 0x23d   :  { %2585 = vst [vmem:[#allocation3 + $0x18] sm:$0xff] %v2540_v21   ;;  %1761 = vmatmul.bf16.gmra.mxu2 %v2540_v21  ;;  %v1438_v28 = vadd.f32 %v1437_v20, %v1409_v23 }
 0x23f   :  { %v1448_v36 = vmax.f32 %v1438_v28, 0.0 }
 0x240   :  { %v1381_v27 = vpop.f32.mrf.mxu2 }
 0x241   :  { %v1382_v30 = vadd.f32 %v3183_v22, %v1381_v27  ;;  %v1456_v26 = vmul.f32 %v1448_v36, %v2995_v55 }
 0x243   :  { %v1411_v32 = vadd.f32 %v1410_v31, %v1382_v30 }
 0x244   :  { %v2686_v34 = vld [vmem:[#allocation3 + $0x14] sm:$0xff]  }
 0x245   :  { %v1440_v37 = vadd.f32 %v1439_v33, %v1411_v32  ;;  %1736 = vmatmul.bf16.gmra.mxu1 %v2686_v34  ;;  %1783 = vmatmul.bf16.gmra.mxu3 %v2686_v34 }
 0x247   :  { %v1449_v2 = vmax.f32 %v1440_v37, 0.0 }
 0x249   :  { %v1457_v38 = vmul.f32 %v1449_v2, %v2993_v54 }
 0x24b   :  { %v2545_v43 = vpack.c.bf16 %v1457_v38, %v1456_v26 }
 0x24d   :  { %2586 = vst [vmem:[#allocation3 + $0x20] sm:$0xff] %v2545_v43   ;;  %1764 = vmatmul.bf16.gmra.mxu2 %v2545_v43 }
 0x254   :  { %v2687_v39 = vld [vmem:[#allocation3 + $0x1c] sm:$0xff]   ;;  %v2644_v22 = vld [vmem:[#allocation3 + $0x24] sm:$0xff] }
 0x255   :  { %1739 = vmatmul.bf16.gmra.mxu1 %v2687_v39  ;;  %1786 = vmatmul.bf16.gmra.mxu3 %v2687_v39 }
 0x265   :  { %1789 = vmatmul.bf16.gmra.mxu3 %v2644_v22 }
 0x29c   :  { %v1754_v40 = vpop.f32.mrf.mxu2 }
 0x29e   :  { %v1729_v41 = vpop.f32.mrf.mxu1 }
 0x29f   :  { %v1730_v45 = vadd.f32 %v2695_v29, %v1729_v41 }
 0x2a1   :  { %v1755_v54 = vadd.f32 %v1754_v40, %v1730_v45 }
 0x2a4   :  { %v1756_v42 = vpop.f32.mrf.mxu2 }
 0x2a6   :  { %v1731_v25 = vpop.f32.mrf.mxu1 }
 0x2a7   :  { %v1732_v52 = vadd.f32 %v2695_v29, %v1731_v25 }
 0x2a9   :  { %v1757_v53 = vadd.f32 %v1756_v42, %v1732_v52 }
 0x2b0   :  { %v1759_v44 = vpop.f32.mrf.mxu2 }
 0x2b2   :  { %v1734_v55 = vpop.f32.mrf.mxu1 }
 0x2b8   :  { %v1760_v46 = vpop.f32.mrf.mxu2  ;;  %v1779_v48 = vpop.f32.mrf.mxu3 }
 0x2b9   :  { %v1780_v49 = vadd.f32 %v1779_v48, %v1755_v54 }
 0x2ba   :  { %v1735_v50 = vpop.f32.mrf.mxu1 }
 0x2bb   :  { %v1795_v62 = vmax.f32 %v1780_v49, 0.0 }
 0x2bd   :  { %1799 = vst [vmem:[%s3229_s4] sm:$0xff] %v1795_v62 }
 0x2c0   :  { %v1762_v56 = vpop.f32.mrf.mxu2  ;;  %v1781_v57 = vpop.f32.mrf.mxu3 }
 0x2c1   :  { %v1782_v58 = vadd.f32 %v1781_v57, %v1757_v53 }
 0x2c2   :  { %v1737_v59 = vpop.f32.mrf.mxu1 }
 0x2c3   :  { %v1796_v51 = vmax.f32 %v1782_v58, 0.0 }
 0x2c5   :  { %1800 = vst [vmem:[%s3229_s4 + $0x8] sm:$0xff] %v1796_v51 }
 0x2c8   :  { %v1763_v9 = vpop.f32.mrf.mxu2  ;;  %v1784_v60 = vpop.f32.mrf.mxu3 }
 0x2ca   :  { %v1738_v24 = vpop.f32.mrf.mxu1 }
 0x2d0   :  { %v1785_v61 = vpop.f32.mrf.mxu3  ;;  %v1765_v5 = vpop.f32.mrf.mxu2 }
 0x2d2   :  { %v1740_v1 = vpop.f32.mrf.mxu1 }
 0x2d3   :  { %v1741_v4 = vadd.f32 %v2695_v29, %v1740_v1 }
 0x2d5   :  { %v1766_v6 = vadd.f32 %v1765_v5, %v1741_v4 }
 0x2d8   :  { %v1787_v63 = vpop.f32.mrf.mxu3  ;;  %v1767_v12 = vpop.f32.mrf.mxu2 }
 0x2da   :  { %v1742_v0 = vpop.f32.mrf.mxu1 }
 0x2db   :  { %v1743_v10 = vadd.f32 %v2695_v29, %v1742_v0 }
 0x2dd   :  { %v1768_v13 = vadd.f32 %v1767_v12, %v1743_v10 }
 0x2e0   :  { %v1788_v3 = vpop.f32.mrf.mxu3 }
 0x2e8   :  { %v1790_v7 = vpop.f32.mrf.mxu3 }
 0x2e9   :  { %v1791_v8 = vadd.f32 %v1790_v7, %v1766_v6 }
 0x2eb   :  { %v1797_v11 = vmax.f32 %v1791_v8, 0.0 }
 0x2ed   :  { %2341 = vst [vmem:[%s3229_s4 + $0x10] sm:$0xff] %v1797_v11 }
 0x2f0   :  { %v1792_v14 = vpop.f32.mrf.mxu3 }
 0x2f1   :  { %v1793_v15 = vadd.f32 %v1792_v14, %v1768_v13 }
 0x2f3   :  { %v1798_v35 = vmax.f32 %v1793_v15, 0.0 }
 0x2f5   :  { %2342 = vst [vmem:[%s3229_s4 + $0x18] sm:$0xff] %v1798_v35 }

</bundles_post_ra>
